<compile_context>
chip_gen: v6e
topology: v6e:2x2x1
jax: 0.10.0
libtpu: 0.0.40
codegen_flags: <defaults>
</compile_context>

<pallas_src>
import jax
import jax.numpy as jnp
from jax.experimental import pallas as pl
from jax.experimental.pallas import tpu as pltpu


def _add_kernel(a_ref, b_ref, o_ref):
    o_ref[...] = a_ref[...] + b_ref[...]


def pallas_add(x479, x464):
    assert x479.shape == x464.shape and x479.dtype == x464.dtype

    n_elems = int(x479.size)
    nbytes = n_elems * jnp.dtype(x479.dtype).itemsize

    return pl.pallas_call(
        _add_kernel,
        out_shape=jax.ShapeDtypeStruct(x479.shape, x479.dtype),
        # Whole-array blocks in native layout: no reshape / relayout, single
        # step, everything resident in VMEM (well under limits on v5e/v6e/v7x).
        in_specs=[
            pl.BlockSpec(memory_space=pltpu.MemorySpace.VMEM),
            pl.BlockSpec(memory_space=pltpu.MemorySpace.VMEM),
        ],
        out_specs=pl.BlockSpec(memory_space=pltpu.MemorySpace.VMEM),
        # Output reuses x479's buffer (XLA copies defensively if x479 is
        # still live / not donated, so this is always safe).
        input_output_aliases={0: 0},
        # Tiny-op hint for XLA's scheduler: 1 flop/elem, 2 reads + 1 write.
        cost_estimate=pl.CostEstimate(
            flops=n_elems,
            transcendentals=0,
            bytes_accessed=3 * nbytes,
        ),
    )(x479, x464)


if __name__ == "__main__":
    key = jax.random.PRNGKey(0)
    k1, k2 = jax.random.split(key)
    # Shapes consistent with the module's forward: [1, 200, 14, 14]
    x479 = jax.random.normal(k1, (1, 200, 14, 14), dtype=jnp.float32)
    x464 = jax.random.normal(k2, (1, 200, 14, 14), dtype=jnp.float32)

    # Reference computed up front (plain JAX / XLA).
    ref = x479 + x464

    out = pallas_add(x479, x464)
    jax.block_until_ready(out)

    assert out.shape == ref.shape
    assert jnp.allclose(out, ref, atol=1e-6, rtol=1e-6), "mismatch vs reference"

    print("KERNEL_OK")
</pallas_src>

<mosaic_0001>
module attributes {stable_mosaic.version = 11 : i64} {
  func.func @_add_kernel(%arg0: memref<1x200x14x14xf32, #tpu.memory_space<vmem>>, %arg1: memref<1x200x14x14xf32, #tpu.memory_space<vmem>>, %arg2: memref<1x200x14x14xf32, #tpu.memory_space<vmem>>) attributes {dimension_semantics = [], scalar_prefetch = 0 : i64, scratch_operands = 0 : i64, tpu.core_type = #tpu.core_type<tc>} {
    %c0 = arith.constant 0 : index
    %c0_0 = arith.constant 0 : index
    %c0_1 = arith.constant 0 : index
    %c0_2 = arith.constant 0 : index
    %0 = vector.load %arg0[%c0, %c0_0, %c0_1, %c0_2] : memref<1x200x14x14xf32, #tpu.memory_space<vmem>>, vector<1x200x14x14xf32>
    %c0_3 = arith.constant 0 : index
    %c0_4 = arith.constant 0 : index
    %c0_5 = arith.constant 0 : index
    %c0_6 = arith.constant 0 : index
    %1 = vector.load %arg1[%c0_3, %c0_4, %c0_5, %c0_6] : memref<1x200x14x14xf32, #tpu.memory_space<vmem>>, vector<1x200x14x14xf32>
    %2 = arith.addf %0, %1 : vector<1x200x14x14xf32>
    %c0_7 = arith.constant 0 : index
    %c0_8 = arith.constant 0 : index
    %c0_9 = arith.constant 0 : index
    %c0_10 = arith.constant 0 : index
    %3 = vector.load %arg2[%c0_7, %c0_8, %c0_9, %c0_10] : memref<1x200x14x14xf32, #tpu.memory_space<vmem>>, vector<1x200x14x14xf32>
    tpu.vector_store %arg2[%c0_7, %c0_8, %c0_9, %c0_10], %2 {strides = array<i32>} : memref<1x200x14x14xf32, #tpu.memory_space<vmem>>, vector<1x200x14x14xf32>,
    return
  }
}

</mosaic_0001>

<bundles_post_ra>
// kernel: tpu_custom_call.1
= control target key start
LH: loop header
LB: loop body
LE: loop exit
PB: predicated region body
PF: predicated region fallthrough
CT: control target
= control target key end

     0   :  { %vm1211_vm0 = vcmask 113664   ;;  %vm1213_vm1 = vcmask 111616   ;;  %s5632_s0 = inlined_call_operand.vmem [shape: f32[1,200,14,14], index: 0, kind: input, shape index: {}, may-alias: {0,2}]   ;;  %s5633_s1 = inlined_call_operand.vmem [shape: f32[1,200,14,14], index: 1, kind: input, shape index: {}]   ;;  %s5634_s2 = inlined_call_operand.vmem [shape: f32[1,200,14,14], index: 2, kind: output, shape index: {}, may-alias: {0,2}]  }
   0x1   :  { %v11_v0 = vld [vmem:[%s5632_s0] sm:$0xff]  ;;  %v12_v2 = vld [vmem:[%s5632_s0 + $0x8] sm:$0x3f]  ;;  %v13_v5 = vld [vmem:[%s5632_s0 + $0x10] sm:$0xff] }
   0x2   :  { %v411_v1 = vld [vmem:[%s5633_s1] sm:$0xff]  ;;  %v412_v4 = vld [vmem:[%s5633_s1 + $0x8] sm:$0x3f]  ;;  %v413_v6 = vld [vmem:[%s5633_s1 + $0x10] sm:$0xff] }
   0x3   :  { %v811_v3 = vadd.f32 %v411_v1, %v11_v0  ;;  %v812_v7 = vadd.f32 %v412_v4, %v12_v2  ;;  %v813_v8 = vadd.f32 %v413_v6, %v13_v5  ;;  %v14_v9 = vld [vmem:[%s5632_s0 + $0x18] sm:$0x3f]  ;;  %v15_v11 = vld [vmem:[%s5632_s0 + $0x20] sm:$0xff]  ;;  %v416_v15 = vld [vmem:[%s5633_s1 + $0x28] sm:$0x3f] }
   0x4   :  { %v414_v10 = vld [vmem:[%s5633_s1 + $0x18] sm:$0x3f]  ;;  %v415_v13 = vld [vmem:[%s5633_s1 + $0x20] sm:$0xff]  ;;  %v417_v19 = vld [vmem:[%s5633_s1 + $0x30] sm:$0xff] }
   0x5   :  { %1212 = vst.msk [vmem:[%s5634_s2] sm:$0xff] %vm1211_vm0, %v811_v3  ;;  %v814_v12 = vadd.f32 %v414_v10, %v14_v9  ;;  %v815_v16 = vadd.f32 %v415_v13, %v15_v11  ;;  %v418_v22 = vld [vmem:[%s5633_s1 + $0x38] sm:$0x3f]  ;;  %v419_v24 = vld [vmem:[%s5633_s1 + $0x40] sm:$0xff]  ;;  %v420_v28 = vld [vmem:[%s5633_s1 + $0x48] sm:$0x3f] }
   0x6   :  { %v421_v31 = vld [vmem:[%s5633_s1 + $0x50] sm:$0xff]  ;;  %v422_v33 = vld [vmem:[%s5633_s1 + $0x58] sm:$0x3f]  ;;  %v423_v37 = vld [vmem:[%s5633_s1 + $0x60] sm:$0xff] }
   0x7   :  { %v424_v40 = vld [vmem:[%s5633_s1 + $0x68] sm:$0x3f]  ;;  %v425_v42 = vld [vmem:[%s5633_s1 + $0x70] sm:$0xff]  ;;  %v426_v46 = vld [vmem:[%s5633_s1 + $0x78] sm:$0x3f] }
   0x8   :  { %v427_v49 = vld [vmem:[%s5633_s1 + $0x80] sm:$0xff]  ;;  %v428_v51 = vld [vmem:[%s5633_s1 + $0x88] sm:$0x3f]  ;;  %v429_v55 = vld [vmem:[%s5633_s1 + $0x90] sm:$0xff] }
   0x9   :  { %v430_v58 = vld [vmem:[%s5633_s1 + $0x98] sm:$0x3f]  ;;  %v431_v60 = vld [vmem:[%s5633_s1 + $0xa0] sm:$0xff]  ;;  %v432_v0 = vld [vmem:[%s5633_s1 + $0xa8] sm:$0x3f] }
   0xa   :  { %v433_v3 = vld [vmem:[%s5633_s1 + $0xb0] sm:$0xff]  ;;  %v434_v5 = vld [vmem:[%s5633_s1 + $0xb8] sm:$0x3f]  ;;  %v435_v9 = vld [vmem:[%s5633_s1 + $0xc0] sm:$0xff] }
   0xc   :  { %v16_v14 = vld [vmem:[%s5632_s0 + $0x28] sm:$0x3f] }
   0xd   :  { %1214 = vst.msk [vmem:[%s5634_s2 + $0x8] sm:$0x3f] %vm1213_vm1, %v812_v7  ;;  %v816_v17 = vadd.f32 %v416_v15, %v16_v14  ;;  %v437_v14 = vld [vmem:[%s5633_s1 + $0xd0] sm:$0xff] }
   0xe   :  { %1215 = vst.msk [vmem:[%s5634_s2 + $0x10] sm:$0xff] %vm1211_vm0, %v813_v8 }
  0x15   :  { %v17_v18 = vld [vmem:[%s5632_s0 + $0x30] sm:$0xff]  ;;  %v18_v20 = vld [vmem:[%s5632_s0 + $0x38] sm:$0x3f] }
  0x16   :  { %1216 = vst.msk [vmem:[%s5634_s2 + $0x18] sm:$0x3f] %vm1213_vm1, %v814_v12  ;;  %v817_v21 = vadd.f32 %v417_v19, %v17_v18  ;;  %v818_v25 = vadd.f32 %v418_v22, %v18_v20  ;;  %v436_v12 = vld [vmem:[%s5633_s1 + $0xc8] sm:$0x3f]  ;;  %v438_v18 = vld [vmem:[%s5633_s1 + $0xd8] sm:$0x3f] }
  0x1d   :  { %v19_v23 = vld [vmem:[%s5632_s0 + $0x40] sm:$0xff] }
  0x1e   :  { %1217 = vst.msk [vmem:[%s5634_s2 + $0x20] sm:$0xff] %vm1211_vm0, %v815_v16  ;;  %v819_v26 = vadd.f32 %v419_v24, %v19_v23  ;;  %v440_v23 = vld [vmem:[%s5633_s1 + $0xe8] sm:$0x3f] }
  0x1f   :  { %1218 = vst.msk [vmem:[%s5634_s2 + $0x28] sm:$0x3f] %vm1213_vm1, %v816_v17 }
  0x26   :  { %v20_v27 = vld [vmem:[%s5632_s0 + $0x48] sm:$0x3f]  ;;  %v21_v29 = vld [vmem:[%s5632_s0 + $0x50] sm:$0xff] }
  0x27   :  { %1219 = vst.msk [vmem:[%s5634_s2 + $0x30] sm:$0xff] %vm1211_vm0, %v817_v21  ;;  %v820_v30 = vadd.f32 %v420_v28, %v20_v27  ;;  %v821_v34 = vadd.f32 %v421_v31, %v21_v29  ;;  %v439_v21 = vld [vmem:[%s5633_s1 + $0xe0] sm:$0xff]  ;;  %v441_v27 = vld [vmem:[%s5633_s1 + $0xf0] sm:$0xff] }
  0x2e   :  { %v22_v32 = vld [vmem:[%s5632_s0 + $0x58] sm:$0x3f] }
  0x2f   :  { %1220 = vst.msk [vmem:[%s5634_s2 + $0x38] sm:$0x3f] %vm1213_vm1, %v818_v25  ;;  %v822_v35 = vadd.f32 %v422_v33, %v22_v32  ;;  %v443_v32 = vld [vmem:[%s5633_s1 + $0x100] sm:$0xff] }
  0x30   :  { %1221 = vst.msk [vmem:[%s5634_s2 + $0x40] sm:$0xff] %vm1211_vm0, %v819_v26 }
  0x37   :  { %v23_v36 = vld [vmem:[%s5632_s0 + $0x60] sm:$0xff]  ;;  %v24_v38 = vld [vmem:[%s5632_s0 + $0x68] sm:$0x3f] }
  0x38   :  { %1222 = vst.msk [vmem:[%s5634_s2 + $0x48] sm:$0x3f] %vm1213_vm1, %v820_v30  ;;  %v823_v39 = vadd.f32 %v423_v37, %v23_v36  ;;  %v824_v43 = vadd.f32 %v424_v40, %v24_v38  ;;  %v442_v30 = vld [vmem:[%s5633_s1 + $0xf8] sm:$0x3f]  ;;  %v444_v36 = vld [vmem:[%s5633_s1 + $0x108] sm:$0x3f] }
  0x3f   :  { %v25_v41 = vld [vmem:[%s5632_s0 + $0x70] sm:$0xff] }
  0x40   :  { %1223 = vst.msk [vmem:[%s5634_s2 + $0x50] sm:$0xff] %vm1211_vm0, %v821_v34  ;;  %v825_v44 = vadd.f32 %v425_v42, %v25_v41  ;;  %v446_v41 = vld [vmem:[%s5633_s1 + $0x118] sm:$0x3f] }
  0x41   :  { %1224 = vst.msk [vmem:[%s5634_s2 + $0x58] sm:$0x3f] %vm1213_vm1, %v822_v35 }
  0x48   :  { %v26_v45 = vld [vmem:[%s5632_s0 + $0x78] sm:$0x3f]  ;;  %v27_v47 = vld [vmem:[%s5632_s0 + $0x80] sm:$0xff] }
  0x49   :  { %1225 = vst.msk [vmem:[%s5634_s2 + $0x60] sm:$0xff] %vm1211_vm0, %v823_v39  ;;  %v826_v48 = vadd.f32 %v426_v46, %v26_v45  ;;  %v827_v52 = vadd.f32 %v427_v49, %v27_v47  ;;  %v445_v39 = vld [vmem:[%s5633_s1 + $0x110] sm:$0xff]  ;;  %v447_v45 = vld [vmem:[%s5633_s1 + $0x120] sm:$0xff] }
  0x50   :  { %v28_v50 = vld [vmem:[%s5632_s0 + $0x88] sm:$0x3f] }
  0x51   :  { %1226 = vst.msk [vmem:[%s5634_s2 + $0x68] sm:$0x3f] %vm1213_vm1, %v824_v43  ;;  %v828_v53 = vadd.f32 %v428_v51, %v28_v50  ;;  %v449_v50 = vld [vmem:[%s5633_s1 + $0x130] sm:$0xff] }
  0x52   :  { %1227 = vst.msk [vmem:[%s5634_s2 + $0x70] sm:$0xff] %vm1211_vm0, %v825_v44 }
  0x59   :  { %v29_v54 = vld [vmem:[%s5632_s0 + $0x90] sm:$0xff]  ;;  %v30_v56 = vld [vmem:[%s5632_s0 + $0x98] sm:$0x3f] }
  0x5a   :  { %1228 = vst.msk [vmem:[%s5634_s2 + $0x78] sm:$0x3f] %vm1213_vm1, %v826_v48  ;;  %v829_v57 = vadd.f32 %v429_v55, %v29_v54  ;;  %v830_v61 = vadd.f32 %v430_v58, %v30_v56  ;;  %v448_v48 = vld [vmem:[%s5633_s1 + $0x128] sm:$0x3f]  ;;  %v450_v54 = vld [vmem:[%s5633_s1 + $0x138] sm:$0x3f] }
  0x61   :  { %v31_v59 = vld [vmem:[%s5632_s0 + $0xa0] sm:$0xff] }
  0x62   :  { %1229 = vst.msk [vmem:[%s5634_s2 + $0x80] sm:$0xff] %vm1211_vm0, %v827_v52  ;;  %v831_v62 = vadd.f32 %v431_v60, %v31_v59  ;;  %v452_v59 = vld [vmem:[%s5633_s1 + $0x148] sm:$0x3f] }
  0x63   :  { %1230 = vst.msk [vmem:[%s5634_s2 + $0x88] sm:$0x3f] %vm1213_vm1, %v828_v53 }
  0x6a   :  { %v32_v63 = vld [vmem:[%s5632_s0 + $0xa8] sm:$0x3f]  ;;  %v33_v1 = vld [vmem:[%s5632_s0 + $0xb0] sm:$0xff] }
  0x6b   :  { %1231 = vst.msk [vmem:[%s5634_s2 + $0x90] sm:$0xff] %vm1211_vm0, %v829_v57  ;;  %v832_v2 = vadd.f32 %v432_v0, %v32_v63  ;;  %v833_v6 = vadd.f32 %v433_v3, %v33_v1  ;;  %v451_v57 = vld [vmem:[%s5633_s1 + $0x140] sm:$0xff]  ;;  %v453_v63 = vld [vmem:[%s5633_s1 + $0x150] sm:$0xff] }
  0x72   :  { %v34_v4 = vld [vmem:[%s5632_s0 + $0xb8] sm:$0x3f] }
  0x73   :  { %1232 = vst.msk [vmem:[%s5634_s2 + $0x98] sm:$0x3f] %vm1213_vm1, %v830_v61  ;;  %v834_v7 = vadd.f32 %v434_v5, %v34_v4  ;;  %v455_v4 = vld [vmem:[%s5633_s1 + $0x160] sm:$0xff] }
  0x74   :  { %1233 = vst.msk [vmem:[%s5634_s2 + $0xa0] sm:$0xff] %vm1211_vm0, %v831_v62 }
  0x7b   :  { %v35_v8 = vld [vmem:[%s5632_s0 + $0xc0] sm:$0xff]  ;;  %v36_v10 = vld [vmem:[%s5632_s0 + $0xc8] sm:$0x3f] }
  0x7c   :  { %1234 = vst.msk [vmem:[%s5634_s2 + $0xa8] sm:$0x3f] %vm1213_vm1, %v832_v2  ;;  %v835_v11 = vadd.f32 %v435_v9, %v35_v8  ;;  %v836_v15 = vadd.f32 %v436_v12, %v36_v10  ;;  %v454_v2 = vld [vmem:[%s5633_s1 + $0x158] sm:$0x3f]  ;;  %v456_v8 = vld [vmem:[%s5633_s1 + $0x168] sm:$0x3f] }
  0x83   :  { %v37_v13 = vld [vmem:[%s5632_s0 + $0xd0] sm:$0xff] }
  0x84   :  { %1235 = vst.msk [vmem:[%s5634_s2 + $0xb0] sm:$0xff] %vm1211_vm0, %v833_v6  ;;  %v837_v16 = vadd.f32 %v437_v14, %v37_v13  ;;  %v458_v13 = vld [vmem:[%s5633_s1 + $0x178] sm:$0x3f] }
  0x85   :  { %1236 = vst.msk [vmem:[%s5634_s2 + $0xb8] sm:$0x3f] %vm1213_vm1, %v834_v7 }
  0x8c   :  { %v38_v17 = vld [vmem:[%s5632_s0 + $0xd8] sm:$0x3f]  ;;  %v39_v19 = vld [vmem:[%s5632_s0 + $0xe0] sm:$0xff] }
  0x8d   :  { %1237 = vst.msk [vmem:[%s5634_s2 + $0xc0] sm:$0xff] %vm1211_vm0, %v835_v11  ;;  %v838_v20 = vadd.f32 %v438_v18, %v38_v17  ;;  %v839_v24 = vadd.f32 %v439_v21, %v39_v19  ;;  %v457_v11 = vld [vmem:[%s5633_s1 + $0x170] sm:$0xff]  ;;  %v459_v17 = vld [vmem:[%s5633_s1 + $0x180] sm:$0xff] }
  0x94   :  { %v40_v22 = vld [vmem:[%s5632_s0 + $0xe8] sm:$0x3f] }
  0x95   :  { %1238 = vst.msk [vmem:[%s5634_s2 + $0xc8] sm:$0x3f] %vm1213_vm1, %v836_v15  ;;  %v840_v25 = vadd.f32 %v440_v23, %v40_v22  ;;  %v461_v22 = vld [vmem:[%s5633_s1 + $0x190] sm:$0xff] }
  0x96   :  { %1239 = vst.msk [vmem:[%s5634_s2 + $0xd0] sm:$0xff] %vm1211_vm0, %v837_v16 }
  0x9d   :  { %v41_v26 = vld [vmem:[%s5632_s0 + $0xf0] sm:$0xff]  ;;  %v42_v28 = vld [vmem:[%s5632_s0 + $0xf8] sm:$0x3f] }
  0x9e   :  { %1240 = vst.msk [vmem:[%s5634_s2 + $0xd8] sm:$0x3f] %vm1213_vm1, %v838_v20  ;;  %v841_v29 = vadd.f32 %v441_v27, %v41_v26  ;;  %v842_v33 = vadd.f32 %v442_v30, %v42_v28  ;;  %v460_v20 = vld [vmem:[%s5633_s1 + $0x188] sm:$0x3f]  ;;  %v462_v26 = vld [vmem:[%s5633_s1 + $0x198] sm:$0x3f] }
  0xa5   :  { %v43_v31 = vld [vmem:[%s5632_s0 + $0x100] sm:$0xff] }
  0xa6   :  { %1241 = vst.msk [vmem:[%s5634_s2 + $0xe0] sm:$0xff] %vm1211_vm0, %v839_v24  ;;  %v843_v34 = vadd.f32 %v443_v32, %v43_v31  ;;  %v464_v31 = vld [vmem:[%s5633_s1 + $0x1a8] sm:$0x3f] }
  0xa7   :  { %1242 = vst.msk [vmem:[%s5634_s2 + $0xe8] sm:$0x3f] %vm1213_vm1, %v840_v25 }
  0xae   :  { %v44_v35 = vld [vmem:[%s5632_s0 + $0x108] sm:$0x3f]  ;;  %v45_v37 = vld [vmem:[%s5632_s0 + $0x110] sm:$0xff] }
  0xaf   :  { %1243 = vst.msk [vmem:[%s5634_s2 + $0xf0] sm:$0xff] %vm1211_vm0, %v841_v29  ;;  %v844_v38 = vadd.f32 %v444_v36, %v44_v35  ;;  %v845_v42 = vadd.f32 %v445_v39, %v45_v37  ;;  %v463_v29 = vld [vmem:[%s5633_s1 + $0x1a0] sm:$0xff]  ;;  %v465_v35 = vld [vmem:[%s5633_s1 + $0x1b0] sm:$0xff] }
  0xb6   :  { %v46_v40 = vld [vmem:[%s5632_s0 + $0x118] sm:$0x3f] }
  0xb7   :  { %1244 = vst.msk [vmem:[%s5634_s2 + $0xf8] sm:$0x3f] %vm1213_vm1, %v842_v33  ;;  %v846_v43 = vadd.f32 %v446_v41, %v46_v40  ;;  %v467_v40 = vld [vmem:[%s5633_s1 + $0x1c0] sm:$0xff] }
  0xb8   :  { %1245 = vst.msk [vmem:[%s5634_s2 + $0x100] sm:$0xff] %vm1211_vm0, %v843_v34 }
  0xbf   :  { %v47_v44 = vld [vmem:[%s5632_s0 + $0x120] sm:$0xff]  ;;  %v48_v46 = vld [vmem:[%s5632_s0 + $0x128] sm:$0x3f] }
  0xc0   :  { %1246 = vst.msk [vmem:[%s5634_s2 + $0x108] sm:$0x3f] %vm1213_vm1, %v844_v38  ;;  %v847_v47 = vadd.f32 %v447_v45, %v47_v44  ;;  %v848_v51 = vadd.f32 %v448_v48, %v48_v46  ;;  %v466_v38 = vld [vmem:[%s5633_s1 + $0x1b8] sm:$0x3f]  ;;  %v468_v44 = vld [vmem:[%s5633_s1 + $0x1c8] sm:$0x3f] }
  0xc7   :  { %v49_v49 = vld [vmem:[%s5632_s0 + $0x130] sm:$0xff] }
  0xc8   :  { %1247 = vst.msk [vmem:[%s5634_s2 + $0x110] sm:$0xff] %vm1211_vm0, %v845_v42  ;;  %v849_v52 = vadd.f32 %v449_v50, %v49_v49  ;;  %v470_v49 = vld [vmem:[%s5633_s1 + $0x1d8] sm:$0x3f] }
  0xc9   :  { %1248 = vst.msk [vmem:[%s5634_s2 + $0x118] sm:$0x3f] %vm1213_vm1, %v846_v43 }
  0xd0   :  { %v50_v53 = vld [vmem:[%s5632_s0 + $0x138] sm:$0x3f]  ;;  %v51_v55 = vld [vmem:[%s5632_s0 + $0x140] sm:$0xff] }
  0xd1   :  { %1249 = vst.msk [vmem:[%s5634_s2 + $0x120] sm:$0xff] %vm1211_vm0, %v847_v47  ;;  %v850_v56 = vadd.f32 %v450_v54, %v50_v53  ;;  %v851_v60 = vadd.f32 %v451_v57, %v51_v55  ;;  %v469_v47 = vld [vmem:[%s5633_s1 + $0x1d0] sm:$0xff]  ;;  %v471_v53 = vld [vmem:[%s5633_s1 + $0x1e0] sm:$0xff] }
  0xd8   :  { %v52_v58 = vld [vmem:[%s5632_s0 + $0x148] sm:$0x3f] }
  0xd9   :  { %1250 = vst.msk [vmem:[%s5634_s2 + $0x128] sm:$0x3f] %vm1213_vm1, %v848_v51  ;;  %v852_v61 = vadd.f32 %v452_v59, %v52_v58  ;;  %v473_v58 = vld [vmem:[%s5633_s1 + $0x1f0] sm:$0xff] }
  0xda   :  { %1251 = vst.msk [vmem:[%s5634_s2 + $0x130] sm:$0xff] %vm1211_vm0, %v849_v52 }
  0xe1   :  { %v53_v62 = vld [vmem:[%s5632_s0 + $0x150] sm:$0xff]  ;;  %v54_v0 = vld [vmem:[%s5632_s0 + $0x158] sm:$0x3f] }
  0xe2   :  { %1252 = vst.msk [vmem:[%s5634_s2 + $0x138] sm:$0x3f] %vm1213_vm1, %v850_v56  ;;  %v853_v1 = vadd.f32 %v453_v63, %v53_v62  ;;  %v854_v5 = vadd.f32 %v454_v2, %v54_v0  ;;  %v472_v56 = vld [vmem:[%s5633_s1 + $0x1e8] sm:$0x3f]  ;;  %v474_v62 = vld [vmem:[%s5633_s1 + $0x1f8] sm:$0x3f] }
  0xe9   :  { %v55_v3 = vld [vmem:[%s5632_s0 + $0x160] sm:$0xff] }
  0xea   :  { %1253 = vst.msk [vmem:[%s5634_s2 + $0x140] sm:$0xff] %vm1211_vm0, %v851_v60  ;;  %v855_v6 = vadd.f32 %v455_v4, %v55_v3  ;;  %v476_v3 = vld [vmem:[%s5633_s1 + $0x208] sm:$0x3f] }
  0xeb   :  { %1254 = vst.msk [vmem:[%s5634_s2 + $0x148] sm:$0x3f] %vm1213_vm1, %v852_v61 }
  0xf2   :  { %v56_v7 = vld [vmem:[%s5632_s0 + $0x168] sm:$0x3f]  ;;  %v57_v9 = vld [vmem:[%s5632_s0 + $0x170] sm:$0xff] }
  0xf3   :  { %1255 = vst.msk [vmem:[%s5634_s2 + $0x150] sm:$0xff] %vm1211_vm0, %v853_v1  ;;  %v856_v10 = vadd.f32 %v456_v8, %v56_v7  ;;  %v857_v14 = vadd.f32 %v457_v11, %v57_v9  ;;  %v475_v1 = vld [vmem:[%s5633_s1 + $0x200] sm:$0xff]  ;;  %v477_v7 = vld [vmem:[%s5633_s1 + $0x210] sm:$0xff] }
  0xfa   :  { %v58_v12 = vld [vmem:[%s5632_s0 + $0x178] sm:$0x3f] }
  0xfb   :  { %1256 = vst.msk [vmem:[%s5634_s2 + $0x158] sm:$0x3f] %vm1213_vm1, %v854_v5  ;;  %v858_v15 = vadd.f32 %v458_v13, %v58_v12  ;;  %v479_v12 = vld [vmem:[%s5633_s1 + $0x220] sm:$0xff] }
  0xfc   :  { %1257 = vst.msk [vmem:[%s5634_s2 + $0x160] sm:$0xff] %vm1211_vm0, %v855_v6 }
 0x103   :  { %v59_v16 = vld [vmem:[%s5632_s0 + $0x180] sm:$0xff]  ;;  %v60_v18 = vld [vmem:[%s5632_s0 + $0x188] sm:$0x3f] }
 0x104   :  { %1258 = vst.msk [vmem:[%s5634_s2 + $0x168] sm:$0x3f] %vm1213_vm1, %v856_v10  ;;  %v859_v19 = vadd.f32 %v459_v17, %v59_v16  ;;  %v860_v23 = vadd.f32 %v460_v20, %v60_v18  ;;  %v478_v10 = vld [vmem:[%s5633_s1 + $0x218] sm:$0x3f]  ;;  %v480_v16 = vld [vmem:[%s5633_s1 + $0x228] sm:$0x3f] }
 0x10b   :  { %v61_v21 = vld [vmem:[%s5632_s0 + $0x190] sm:$0xff] }
 0x10c   :  { %1259 = vst.msk [vmem:[%s5634_s2 + $0x170] sm:$0xff] %vm1211_vm0, %v857_v14  ;;  %v861_v24 = vadd.f32 %v461_v22, %v61_v21  ;;  %v482_v21 = vld [vmem:[%s5633_s1 + $0x238] sm:$0x3f] }
 0x10d   :  { %1260 = vst.msk [vmem:[%s5634_s2 + $0x178] sm:$0x3f] %vm1213_vm1, %v858_v15 }
 0x114   :  { %v62_v25 = vld [vmem:[%s5632_s0 + $0x198] sm:$0x3f]  ;;  %v63_v27 = vld [vmem:[%s5632_s0 + $0x1a0] sm:$0xff] }
 0x115   :  { %1261 = vst.msk [vmem:[%s5634_s2 + $0x180] sm:$0xff] %vm1211_vm0, %v859_v19  ;;  %v862_v28 = vadd.f32 %v462_v26, %v62_v25  ;;  %v863_v32 = vadd.f32 %v463_v29, %v63_v27  ;;  %v481_v19 = vld [vmem:[%s5633_s1 + $0x230] sm:$0xff]  ;;  %v483_v25 = vld [vmem:[%s5633_s1 + $0x240] sm:$0xff] }
 0x11c   :  { %v64_v30 = vld [vmem:[%s5632_s0 + $0x1a8] sm:$0x3f] }
 0x11d   :  { %1262 = vst.msk [vmem:[%s5634_s2 + $0x188] sm:$0x3f] %vm1213_vm1, %v860_v23  ;;  %v864_v33 = vadd.f32 %v464_v31, %v64_v30  ;;  %v485_v30 = vld [vmem:[%s5633_s1 + $0x250] sm:$0xff] }
 0x11e   :  { %1263 = vst.msk [vmem:[%s5634_s2 + $0x190] sm:$0xff] %vm1211_vm0, %v861_v24 }
 0x125   :  { %v65_v34 = vld [vmem:[%s5632_s0 + $0x1b0] sm:$0xff]  ;;  %v66_v36 = vld [vmem:[%s5632_s0 + $0x1b8] sm:$0x3f] }
 0x126   :  { %1264 = vst.msk [vmem:[%s5634_s2 + $0x198] sm:$0x3f] %vm1213_vm1, %v862_v28  ;;  %v865_v37 = vadd.f32 %v465_v35, %v65_v34  ;;  %v866_v41 = vadd.f32 %v466_v38, %v66_v36  ;;  %v484_v28 = vld [vmem:[%s5633_s1 + $0x248] sm:$0x3f]  ;;  %v486_v34 = vld [vmem:[%s5633_s1 + $0x258] sm:$0x3f] }
 0x12d   :  { %v67_v39 = vld [vmem:[%s5632_s0 + $0x1c0] sm:$0xff] }
 0x12e   :  { %1265 = vst.msk [vmem:[%s5634_s2 + $0x1a0] sm:$0xff] %vm1211_vm0, %v863_v32  ;;  %v867_v42 = vadd.f32 %v467_v40, %v67_v39  ;;  %v488_v39 = vld [vmem:[%s5633_s1 + $0x268] sm:$0x3f] }
 0x12f   :  { %1266 = vst.msk [vmem:[%s5634_s2 + $0x1a8] sm:$0x3f] %vm1213_vm1, %v864_v33 }
 0x136   :  { %v68_v43 = vld [vmem:[%s5632_s0 + $0x1c8] sm:$0x3f]  ;;  %v69_v45 = vld [vmem:[%s5632_s0 + $0x1d0] sm:$0xff] }
 0x137   :  { %1267 = vst.msk [vmem:[%s5634_s2 + $0x1b0] sm:$0xff] %vm1211_vm0, %v865_v37  ;;  %v868_v46 = vadd.f32 %v468_v44, %v68_v43  ;;  %v869_v50 = vadd.f32 %v469_v47, %v69_v45  ;;  %v487_v37 = vld [vmem:[%s5633_s1 + $0x260] sm:$0xff]  ;;  %v489_v43 = vld [vmem:[%s5633_s1 + $0x270] sm:$0xff] }
 0x13e   :  { %v70_v48 = vld [vmem:[%s5632_s0 + $0x1d8] sm:$0x3f] }
 0x13f   :  { %1268 = vst.msk [vmem:[%s5634_s2 + $0x1b8] sm:$0x3f] %vm1213_vm1, %v866_v41  ;;  %v870_v51 = vadd.f32 %v470_v49, %v70_v48  ;;  %v491_v48 = vld [vmem:[%s5633_s1 + $0x280] sm:$0xff] }
 0x140   :  { %1269 = vst.msk [vmem:[%s5634_s2 + $0x1c0] sm:$0xff] %vm1211_vm0, %v867_v42 }
 0x147   :  { %v71_v52 = vld [vmem:[%s5632_s0 + $0x1e0] sm:$0xff]  ;;  %v72_v54 = vld [vmem:[%s5632_s0 + $0x1e8] sm:$0x3f] }
 0x148   :  { %1270 = vst.msk [vmem:[%s5634_s2 + $0x1c8] sm:$0x3f] %vm1213_vm1, %v868_v46  ;;  %v871_v55 = vadd.f32 %v471_v53, %v71_v52  ;;  %v872_v59 = vadd.f32 %v472_v56, %v72_v54  ;;  %v490_v46 = vld [vmem:[%s5633_s1 + $0x278] sm:$0x3f]  ;;  %v492_v52 = vld [vmem:[%s5633_s1 + $0x288] sm:$0x3f] }
 0x14f   :  { %v73_v57 = vld [vmem:[%s5632_s0 + $0x1f0] sm:$0xff] }
 0x150   :  { %1271 = vst.msk [vmem:[%s5634_s2 + $0x1d0] sm:$0xff] %vm1211_vm0, %v869_v50  ;;  %v873_v60 = vadd.f32 %v473_v58, %v73_v57  ;;  %v494_v57 = vld [vmem:[%s5633_s1 + $0x298] sm:$0x3f] }
 0x151   :  { %1272 = vst.msk [vmem:[%s5634_s2 + $0x1d8] sm:$0x3f] %vm1213_vm1, %v870_v51 }
 0x158   :  { %v74_v61 = vld [vmem:[%s5632_s0 + $0x1f8] sm:$0x3f]  ;;  %v75_v63 = vld [vmem:[%s5632_s0 + $0x200] sm:$0xff] }
 0x159   :  { %1273 = vst.msk [vmem:[%s5634_s2 + $0x1e0] sm:$0xff] %vm1211_vm0, %v871_v55  ;;  %v874_v0 = vadd.f32 %v474_v62, %v74_v61  ;;  %v875_v4 = vadd.f32 %v475_v1, %v75_v63  ;;  %v493_v55 = vld [vmem:[%s5633_s1 + $0x290] sm:$0xff]  ;;  %v495_v61 = vld [vmem:[%s5633_s1 + $0x2a0] sm:$0xff] }
 0x160   :  { %v76_v2 = vld [vmem:[%s5632_s0 + $0x208] sm:$0x3f] }
 0x161   :  { %1274 = vst.msk [vmem:[%s5634_s2 + $0x1e8] sm:$0x3f] %vm1213_vm1, %v872_v59  ;;  %v876_v5 = vadd.f32 %v476_v3, %v76_v2  ;;  %v497_v2 = vld [vmem:[%s5633_s1 + $0x2b0] sm:$0xff] }
 0x162   :  { %1275 = vst.msk [vmem:[%s5634_s2 + $0x1f0] sm:$0xff] %vm1211_vm0, %v873_v60 }
 0x169   :  { %v77_v6 = vld [vmem:[%s5632_s0 + $0x210] sm:$0xff]  ;;  %v78_v8 = vld [vmem:[%s5632_s0 + $0x218] sm:$0x3f] }
 0x16a   :  { %1276 = vst.msk [vmem:[%s5634_s2 + $0x1f8] sm:$0x3f] %vm1213_vm1, %v874_v0  ;;  %v877_v9 = vadd.f32 %v477_v7, %v77_v6  ;;  %v878_v13 = vadd.f32 %v478_v10, %v78_v8  ;;  %v496_v0 = vld [vmem:[%s5633_s1 + $0x2a8] sm:$0x3f]  ;;  %v498_v6 = vld [vmem:[%s5633_s1 + $0x2b8] sm:$0x3f] }
 0x171   :  { %v79_v11 = vld [vmem:[%s5632_s0 + $0x220] sm:$0xff] }
 0x172   :  { %1277 = vst.msk [vmem:[%s5634_s2 + $0x200] sm:$0xff] %vm1211_vm0, %v875_v4  ;;  %v879_v14 = vadd.f32 %v479_v12, %v79_v11  ;;  %v500_v11 = vld [vmem:[%s5633_s1 + $0x2c8] sm:$0x3f] }
 0x173   :  { %1278 = vst.msk [vmem:[%s5634_s2 + $0x208] sm:$0x3f] %vm1213_vm1, %v876_v5 }
 0x17a   :  { %v80_v15 = vld [vmem:[%s5632_s0 + $0x228] sm:$0x3f]  ;;  %v81_v17 = vld [vmem:[%s5632_s0 + $0x230] sm:$0xff] }
 0x17b   :  { %1279 = vst.msk [vmem:[%s5634_s2 + $0x210] sm:$0xff] %vm1211_vm0, %v877_v9  ;;  %v880_v18 = vadd.f32 %v480_v16, %v80_v15  ;;  %v881_v22 = vadd.f32 %v481_v19, %v81_v17  ;;  %v499_v9 = vld [vmem:[%s5633_s1 + $0x2c0] sm:$0xff]  ;;  %v501_v15 = vld [vmem:[%s5633_s1 + $0x2d0] sm:$0xff] }
 0x182   :  { %v82_v20 = vld [vmem:[%s5632_s0 + $0x238] sm:$0x3f] }
 0x183   :  { %1280 = vst.msk [vmem:[%s5634_s2 + $0x218] sm:$0x3f] %vm1213_vm1, %v878_v13  ;;  %v882_v23 = vadd.f32 %v482_v21, %v82_v20  ;;  %v503_v20 = vld [vmem:[%s5633_s1 + $0x2e0] sm:$0xff] }
 0x184   :  { %1281 = vst.msk [vmem:[%s5634_s2 + $0x220] sm:$0xff] %vm1211_vm0, %v879_v14 }
 0x18b   :  { %v83_v24 = vld [vmem:[%s5632_s0 + $0x240] sm:$0xff]  ;;  %v84_v26 = vld [vmem:[%s5632_s0 + $0x248] sm:$0x3f] }
 0x18c   :  { %1282 = vst.msk [vmem:[%s5634_s2 + $0x228] sm:$0x3f] %vm1213_vm1, %v880_v18  ;;  %v883_v27 = vadd.f32 %v483_v25, %v83_v24  ;;  %v884_v31 = vadd.f32 %v484_v28, %v84_v26  ;;  %v502_v18 = vld [vmem:[%s5633_s1 + $0x2d8] sm:$0x3f]  ;;  %v504_v24 = vld [vmem:[%s5633_s1 + $0x2e8] sm:$0x3f] }
 0x193   :  { %v85_v29 = vld [vmem:[%s5632_s0 + $0x250] sm:$0xff] }
 0x194   :  { %1283 = vst.msk [vmem:[%s5634_s2 + $0x230] sm:$0xff] %vm1211_vm0, %v881_v22  ;;  %v885_v32 = vadd.f32 %v485_v30, %v85_v29  ;;  %v506_v29 = vld [vmem:[%s5633_s1 + $0x2f8] sm:$0x3f] }
 0x195   :  { %1284 = vst.msk [vmem:[%s5634_s2 + $0x238] sm:$0x3f] %vm1213_vm1, %v882_v23 }
 0x19c   :  { %v86_v33 = vld [vmem:[%s5632_s0 + $0x258] sm:$0x3f]  ;;  %v87_v35 = vld [vmem:[%s5632_s0 + $0x260] sm:$0xff] }
 0x19d   :  { %1285 = vst.msk [vmem:[%s5634_s2 + $0x240] sm:$0xff] %vm1211_vm0, %v883_v27  ;;  %v886_v36 = vadd.f32 %v486_v34, %v86_v33  ;;  %v887_v40 = vadd.f32 %v487_v37, %v87_v35  ;;  %v505_v27 = vld [vmem:[%s5633_s1 + $0x2f0] sm:$0xff]  ;;  %v507_v33 = vld [vmem:[%s5633_s1 + $0x300] sm:$0xff] }
 0x1a4   :  { %v88_v38 = vld [vmem:[%s5632_s0 + $0x268] sm:$0x3f] }
 0x1a5   :  { %1286 = vst.msk [vmem:[%s5634_s2 + $0x248] sm:$0x3f] %vm1213_vm1, %v884_v31  ;;  %v888_v41 = vadd.f32 %v488_v39, %v88_v38  ;;  %v509_v38 = vld [vmem:[%s5633_s1 + $0x310] sm:$0xff] }
 0x1a6   :  { %1287 = vst.msk [vmem:[%s5634_s2 + $0x250] sm:$0xff] %vm1211_vm0, %v885_v32 }
 0x1ad   :  { %v89_v42 = vld [vmem:[%s5632_s0 + $0x270] sm:$0xff]  ;;  %v90_v44 = vld [vmem:[%s5632_s0 + $0x278] sm:$0x3f] }
 0x1ae   :  { %1288 = vst.msk [vmem:[%s5634_s2 + $0x258] sm:$0x3f] %vm1213_vm1, %v886_v36  ;;  %v889_v45 = vadd.f32 %v489_v43, %v89_v42  ;;  %v890_v49 = vadd.f32 %v490_v46, %v90_v44  ;;  %v508_v36 = vld [vmem:[%s5633_s1 + $0x308] sm:$0x3f]  ;;  %v510_v42 = vld [vmem:[%s5633_s1 + $0x318] sm:$0x3f] }
 0x1b5   :  { %v91_v47 = vld [vmem:[%s5632_s0 + $0x280] sm:$0xff] }
 0x1b6   :  { %1289 = vst.msk [vmem:[%s5634_s2 + $0x260] sm:$0xff] %vm1211_vm0, %v887_v40  ;;  %v891_v50 = vadd.f32 %v491_v48, %v91_v47  ;;  %v512_v47 = vld [vmem:[%s5633_s1 + $0x328] sm:$0x3f] }
 0x1b7   :  { %1290 = vst.msk [vmem:[%s5634_s2 + $0x268] sm:$0x3f] %vm1213_vm1, %v888_v41 }
 0x1be   :  { %v92_v51 = vld [vmem:[%s5632_s0 + $0x288] sm:$0x3f]  ;;  %v93_v53 = vld [vmem:[%s5632_s0 + $0x290] sm:$0xff] }
 0x1bf   :  { %1291 = vst.msk [vmem:[%s5634_s2 + $0x270] sm:$0xff] %vm1211_vm0, %v889_v45  ;;  %v892_v54 = vadd.f32 %v492_v52, %v92_v51  ;;  %v893_v58 = vadd.f32 %v493_v55, %v93_v53  ;;  %v511_v45 = vld [vmem:[%s5633_s1 + $0x320] sm:$0xff]  ;;  %v513_v51 = vld [vmem:[%s5633_s1 + $0x330] sm:$0xff] }
 0x1c6   :  { %v94_v56 = vld [vmem:[%s5632_s0 + $0x298] sm:$0x3f] }
 0x1c7   :  { %1292 = vst.msk [vmem:[%s5634_s2 + $0x278] sm:$0x3f] %vm1213_vm1, %v890_v49  ;;  %v894_v59 = vadd.f32 %v494_v57, %v94_v56  ;;  %v515_v56 = vld [vmem:[%s5633_s1 + $0x340] sm:$0xff] }
 0x1c8   :  { %1293 = vst.msk [vmem:[%s5634_s2 + $0x280] sm:$0xff] %vm1211_vm0, %v891_v50 }
 0x1cf   :  { %v95_v60 = vld [vmem:[%s5632_s0 + $0x2a0] sm:$0xff]  ;;  %v96_v62 = vld [vmem:[%s5632_s0 + $0x2a8] sm:$0x3f] }
 0x1d0   :  { %1294 = vst.msk [vmem:[%s5634_s2 + $0x288] sm:$0x3f] %vm1213_vm1, %v892_v54  ;;  %v895_v63 = vadd.f32 %v495_v61, %v95_v60  ;;  %v896_v3 = vadd.f32 %v496_v0, %v96_v62  ;;  %v514_v54 = vld [vmem:[%s5633_s1 + $0x338] sm:$0x3f]  ;;  %v516_v60 = vld [vmem:[%s5633_s1 + $0x348] sm:$0x3f] }
 0x1d7   :  { %v97_v1 = vld [vmem:[%s5632_s0 + $0x2b0] sm:$0xff] }
 0x1d8   :  { %1295 = vst.msk [vmem:[%s5634_s2 + $0x290] sm:$0xff] %vm1211_vm0, %v893_v58  ;;  %v897_v4 = vadd.f32 %v497_v2, %v97_v1  ;;  %v518_v1 = vld [vmem:[%s5633_s1 + $0x358] sm:$0x3f] }
 0x1d9   :  { %1296 = vst.msk [vmem:[%s5634_s2 + $0x298] sm:$0x3f] %vm1213_vm1, %v894_v59 }
 0x1e0   :  { %v98_v5 = vld [vmem:[%s5632_s0 + $0x2b8] sm:$0x3f]  ;;  %v99_v7 = vld [vmem:[%s5632_s0 + $0x2c0] sm:$0xff] }
 0x1e1   :  { %1297 = vst.msk [vmem:[%s5634_s2 + $0x2a0] sm:$0xff] %vm1211_vm0, %v895_v63  ;;  %v898_v8 = vadd.f32 %v498_v6, %v98_v5  ;;  %v899_v12 = vadd.f32 %v499_v9, %v99_v7  ;;  %v517_v63 = vld [vmem:[%s5633_s1 + $0x350] sm:$0xff]  ;;  %v519_v5 = vld [vmem:[%s5633_s1 + $0x360] sm:$0xff] }
 0x1e8   :  { %v100_v10 = vld [vmem:[%s5632_s0 + $0x2c8] sm:$0x3f] }
 0x1e9   :  { %1298 = vst.msk [vmem:[%s5634_s2 + $0x2a8] sm:$0x3f] %vm1213_vm1, %v896_v3  ;;  %v900_v13 = vadd.f32 %v500_v11, %v100_v10  ;;  %v521_v10 = vld [vmem:[%s5633_s1 + $0x370] sm:$0xff] }
 0x1ea   :  { %1299 = vst.msk [vmem:[%s5634_s2 + $0x2b0] sm:$0xff] %vm1211_vm0, %v897_v4 }
 0x1f1   :  { %v101_v14 = vld [vmem:[%s5632_s0 + $0x2d0] sm:$0xff]  ;;  %v102_v16 = vld [vmem:[%s5632_s0 + $0x2d8] sm:$0x3f] }
 0x1f2   :  { %1300 = vst.msk [vmem:[%s5634_s2 + $0x2b8] sm:$0x3f] %vm1213_vm1, %v898_v8  ;;  %v901_v17 = vadd.f32 %v501_v15, %v101_v14  ;;  %v902_v21 = vadd.f32 %v502_v18, %v102_v16  ;;  %v520_v8 = vld [vmem:[%s5633_s1 + $0x368] sm:$0x3f]  ;;  %v522_v14 = vld [vmem:[%s5633_s1 + $0x378] sm:$0x3f] }
 0x1f9   :  { %v103_v19 = vld [vmem:[%s5632_s0 + $0x2e0] sm:$0xff] }
 0x1fa   :  { %1301 = vst.msk [vmem:[%s5634_s2 + $0x2c0] sm:$0xff] %vm1211_vm0, %v899_v12  ;;  %v903_v22 = vadd.f32 %v503_v20, %v103_v19  ;;  %v524_v19 = vld [vmem:[%s5633_s1 + $0x388] sm:$0x3f] }
 0x1fb   :  { %1302 = vst.msk [vmem:[%s5634_s2 + $0x2c8] sm:$0x3f] %vm1213_vm1, %v900_v13 }
 0x202   :  { %v104_v23 = vld [vmem:[%s5632_s0 + $0x2e8] sm:$0x3f]  ;;  %v105_v25 = vld [vmem:[%s5632_s0 + $0x2f0] sm:$0xff] }
 0x203   :  { %1303 = vst.msk [vmem:[%s5634_s2 + $0x2d0] sm:$0xff] %vm1211_vm0, %v901_v17  ;;  %v904_v26 = vadd.f32 %v504_v24, %v104_v23  ;;  %v905_v30 = vadd.f32 %v505_v27, %v105_v25  ;;  %v523_v17 = vld [vmem:[%s5633_s1 + $0x380] sm:$0xff]  ;;  %v525_v23 = vld [vmem:[%s5633_s1 + $0x390] sm:$0xff] }
 0x20a   :  { %v106_v28 = vld [vmem:[%s5632_s0 + $0x2f8] sm:$0x3f] }
 0x20b   :  { %1304 = vst.msk [vmem:[%s5634_s2 + $0x2d8] sm:$0x3f] %vm1213_vm1, %v902_v21  ;;  %v906_v31 = vadd.f32 %v506_v29, %v106_v28  ;;  %v527_v28 = vld [vmem:[%s5633_s1 + $0x3a0] sm:$0xff] }
 0x20c   :  { %1305 = vst.msk [vmem:[%s5634_s2 + $0x2e0] sm:$0xff] %vm1211_vm0, %v903_v22 }
 0x213   :  { %v107_v32 = vld [vmem:[%s5632_s0 + $0x300] sm:$0xff]  ;;  %v108_v34 = vld [vmem:[%s5632_s0 + $0x308] sm:$0x3f] }
 0x214   :  { %1306 = vst.msk [vmem:[%s5634_s2 + $0x2e8] sm:$0x3f] %vm1213_vm1, %v904_v26  ;;  %v907_v35 = vadd.f32 %v507_v33, %v107_v32  ;;  %v908_v39 = vadd.f32 %v508_v36, %v108_v34  ;;  %v526_v26 = vld [vmem:[%s5633_s1 + $0x398] sm:$0x3f]  ;;  %v528_v32 = vld [vmem:[%s5633_s1 + $0x3a8] sm:$0x3f] }
 0x21b   :  { %v109_v37 = vld [vmem:[%s5632_s0 + $0x310] sm:$0xff] }
 0x21c   :  { %1307 = vst.msk [vmem:[%s5634_s2 + $0x2f0] sm:$0xff] %vm1211_vm0, %v905_v30  ;;  %v909_v40 = vadd.f32 %v509_v38, %v109_v37  ;;  %v530_v37 = vld [vmem:[%s5633_s1 + $0x3b8] sm:$0x3f] }
 0x21d   :  { %1308 = vst.msk [vmem:[%s5634_s2 + $0x2f8] sm:$0x3f] %vm1213_vm1, %v906_v31 }
 0x224   :  { %v110_v41 = vld [vmem:[%s5632_s0 + $0x318] sm:$0x3f]  ;;  %v111_v43 = vld [vmem:[%s5632_s0 + $0x320] sm:$0xff] }
 0x225   :  { %1309 = vst.msk [vmem:[%s5634_s2 + $0x300] sm:$0xff] %vm1211_vm0, %v907_v35  ;;  %v910_v44 = vadd.f32 %v510_v42, %v110_v41  ;;  %v911_v48 = vadd.f32 %v511_v45, %v111_v43  ;;  %v529_v35 = vld [vmem:[%s5633_s1 + $0x3b0] sm:$0xff]  ;;  %v531_v41 = vld [vmem:[%s5633_s1 + $0x3c0] sm:$0xff] }
 0x22c   :  { %v112_v46 = vld [vmem:[%s5632_s0 + $0x328] sm:$0x3f] }
 0x22d   :  { %1310 = vst.msk [vmem:[%s5634_s2 + $0x308] sm:$0x3f] %vm1213_vm1, %v908_v39  ;;  %v912_v49 = vadd.f32 %v512_v47, %v112_v46  ;;  %v533_v46 = vld [vmem:[%s5633_s1 + $0x3d0] sm:$0xff] }
 0x22e   :  { %1311 = vst.msk [vmem:[%s5634_s2 + $0x310] sm:$0xff] %vm1211_vm0, %v909_v40 }
 0x235   :  { %v113_v50 = vld [vmem:[%s5632_s0 + $0x330] sm:$0xff]  ;;  %v114_v52 = vld [vmem:[%s5632_s0 + $0x338] sm:$0x3f] }
 0x236   :  { %1312 = vst.msk [vmem:[%s5634_s2 + $0x318] sm:$0x3f] %vm1213_vm1, %v910_v44  ;;  %v913_v53 = vadd.f32 %v513_v51, %v113_v50  ;;  %v914_v57 = vadd.f32 %v514_v54, %v114_v52  ;;  %v532_v44 = vld [vmem:[%s5633_s1 + $0x3c8] sm:$0x3f]  ;;  %v534_v50 = vld [vmem:[%s5633_s1 + $0x3d8] sm:$0x3f] }
 0x23d   :  { %v115_v55 = vld [vmem:[%s5632_s0 + $0x340] sm:$0xff] }
 0x23e   :  { %1313 = vst.msk [vmem:[%s5634_s2 + $0x320] sm:$0xff] %vm1211_vm0, %v911_v48  ;;  %v915_v58 = vadd.f32 %v515_v56, %v115_v55  ;;  %v536_v55 = vld [vmem:[%s5633_s1 + $0x3e8] sm:$0x3f] }
 0x23f   :  { %1314 = vst.msk [vmem:[%s5634_s2 + $0x328] sm:$0x3f] %vm1213_vm1, %v912_v49 }
 0x246   :  { %v116_v59 = vld [vmem:[%s5632_s0 + $0x348] sm:$0x3f]  ;;  %v117_v61 = vld [vmem:[%s5632_s0 + $0x350] sm:$0xff] }
 0x247   :  { %1315 = vst.msk [vmem:[%s5634_s2 + $0x330] sm:$0xff] %vm1211_vm0, %v913_v53  ;;  %v916_v62 = vadd.f32 %v516_v60, %v116_v59  ;;  %v917_v2 = vadd.f32 %v517_v63, %v117_v61  ;;  %v535_v53 = vld [vmem:[%s5633_s1 + $0x3e0] sm:$0xff]  ;;  %v537_v59 = vld [vmem:[%s5633_s1 + $0x3f0] sm:$0xff] }
 0x24e   :  { %v118_v0 = vld [vmem:[%s5632_s0 + $0x358] sm:$0x3f] }
 0x24f   :  { %1316 = vst.msk [vmem:[%s5634_s2 + $0x338] sm:$0x3f] %vm1213_vm1, %v914_v57  ;;  %v918_v3 = vadd.f32 %v518_v1, %v118_v0  ;;  %v539_v0 = vld [vmem:[%s5633_s1 + $0x400] sm:$0xff] }
 0x250   :  { %1317 = vst.msk [vmem:[%s5634_s2 + $0x340] sm:$0xff] %vm1211_vm0, %v915_v58 }
 0x257   :  { %v119_v4 = vld [vmem:[%s5632_s0 + $0x360] sm:$0xff]  ;;  %v120_v6 = vld [vmem:[%s5632_s0 + $0x368] sm:$0x3f] }
 0x258   :  { %1318 = vst.msk [vmem:[%s5634_s2 + $0x348] sm:$0x3f] %vm1213_vm1, %v916_v62  ;;  %v919_v7 = vadd.f32 %v519_v5, %v119_v4  ;;  %v920_v11 = vadd.f32 %v520_v8, %v120_v6  ;;  %v538_v62 = vld [vmem:[%s5633_s1 + $0x3f8] sm:$0x3f]  ;;  %v540_v4 = vld [vmem:[%s5633_s1 + $0x408] sm:$0x3f] }
 0x25f   :  { %v121_v9 = vld [vmem:[%s5632_s0 + $0x370] sm:$0xff] }
 0x260   :  { %1319 = vst.msk [vmem:[%s5634_s2 + $0x350] sm:$0xff] %vm1211_vm0, %v917_v2  ;;  %v921_v12 = vadd.f32 %v521_v10, %v121_v9  ;;  %v542_v9 = vld [vmem:[%s5633_s1 + $0x418] sm:$0x3f] }
 0x261   :  { %1320 = vst.msk [vmem:[%s5634_s2 + $0x358] sm:$0x3f] %vm1213_vm1, %v918_v3 }
 0x268   :  { %v122_v13 = vld [vmem:[%s5632_s0 + $0x378] sm:$0x3f]  ;;  %v123_v15 = vld [vmem:[%s5632_s0 + $0x380] sm:$0xff] }
 0x269   :  { %1321 = vst.msk [vmem:[%s5634_s2 + $0x360] sm:$0xff] %vm1211_vm0, %v919_v7  ;;  %v922_v16 = vadd.f32 %v522_v14, %v122_v13  ;;  %v923_v20 = vadd.f32 %v523_v17, %v123_v15  ;;  %v541_v7 = vld [vmem:[%s5633_s1 + $0x410] sm:$0xff]  ;;  %v543_v13 = vld [vmem:[%s5633_s1 + $0x420] sm:$0xff] }
 0x270   :  { %v124_v18 = vld [vmem:[%s5632_s0 + $0x388] sm:$0x3f] }
 0x271   :  { %1322 = vst.msk [vmem:[%s5634_s2 + $0x368] sm:$0x3f] %vm1213_vm1, %v920_v11  ;;  %v924_v21 = vadd.f32 %v524_v19, %v124_v18  ;;  %v545_v18 = vld [vmem:[%s5633_s1 + $0x430] sm:$0xff] }
 0x272   :  { %1323 = vst.msk [vmem:[%s5634_s2 + $0x370] sm:$0xff] %vm1211_vm0, %v921_v12 }
 0x279   :  { %v125_v22 = vld [vmem:[%s5632_s0 + $0x390] sm:$0xff]  ;;  %v126_v24 = vld [vmem:[%s5632_s0 + $0x398] sm:$0x3f] }
 0x27a   :  { %1324 = vst.msk [vmem:[%s5634_s2 + $0x378] sm:$0x3f] %vm1213_vm1, %v922_v16  ;;  %v925_v25 = vadd.f32 %v525_v23, %v125_v22  ;;  %v926_v29 = vadd.f32 %v526_v26, %v126_v24  ;;  %v544_v16 = vld [vmem:[%s5633_s1 + $0x428] sm:$0x3f]  ;;  %v546_v22 = vld [vmem:[%s5633_s1 + $0x438] sm:$0x3f] }
 0x281   :  { %v127_v27 = vld [vmem:[%s5632_s0 + $0x3a0] sm:$0xff] }
 0x282   :  { %1325 = vst.msk [vmem:[%s5634_s2 + $0x380] sm:$0xff] %vm1211_vm0, %v923_v20  ;;  %v927_v30 = vadd.f32 %v527_v28, %v127_v27  ;;  %v548_v27 = vld [vmem:[%s5633_s1 + $0x448] sm:$0x3f] }
 0x283   :  { %1326 = vst.msk [vmem:[%s5634_s2 + $0x388] sm:$0x3f] %vm1213_vm1, %v924_v21 }
 0x28a   :  { %v128_v31 = vld [vmem:[%s5632_s0 + $0x3a8] sm:$0x3f]  ;;  %v129_v33 = vld [vmem:[%s5632_s0 + $0x3b0] sm:$0xff] }
 0x28b   :  { %1327 = vst.msk [vmem:[%s5634_s2 + $0x390] sm:$0xff] %vm1211_vm0, %v925_v25  ;;  %v928_v34 = vadd.f32 %v528_v32, %v128_v31  ;;  %v929_v38 = vadd.f32 %v529_v35, %v129_v33  ;;  %v547_v25 = vld [vmem:[%s5633_s1 + $0x440] sm:$0xff]  ;;  %v549_v31 = vld [vmem:[%s5633_s1 + $0x450] sm:$0xff] }
 0x292   :  { %v130_v36 = vld [vmem:[%s5632_s0 + $0x3b8] sm:$0x3f] }
 0x293   :  { %1328 = vst.msk [vmem:[%s5634_s2 + $0x398] sm:$0x3f] %vm1213_vm1, %v926_v29  ;;  %v930_v39 = vadd.f32 %v530_v37, %v130_v36  ;;  %v551_v36 = vld [vmem:[%s5633_s1 + $0x460] sm:$0xff] }
 0x294   :  { %1329 = vst.msk [vmem:[%s5634_s2 + $0x3a0] sm:$0xff] %vm1211_vm0, %v927_v30 }
 0x29b   :  { %v131_v40 = vld [vmem:[%s5632_s0 + $0x3c0] sm:$0xff]  ;;  %v132_v42 = vld [vmem:[%s5632_s0 + $0x3c8] sm:$0x3f] }
 0x29c   :  { %1330 = vst.msk [vmem:[%s5634_s2 + $0x3a8] sm:$0x3f] %vm1213_vm1, %v928_v34  ;;  %v931_v43 = vadd.f32 %v531_v41, %v131_v40  ;;  %v932_v47 = vadd.f32 %v532_v44, %v132_v42  ;;  %v550_v34 = vld [vmem:[%s5633_s1 + $0x458] sm:$0x3f]  ;;  %v552_v40 = vld [vmem:[%s5633_s1 + $0x468] sm:$0x3f] }
 0x2a3   :  { %v133_v45 = vld [vmem:[%s5632_s0 + $0x3d0] sm:$0xff] }
 0x2a4   :  { %1331 = vst.msk [vmem:[%s5634_s2 + $0x3b0] sm:$0xff] %vm1211_vm0, %v929_v38  ;;  %v933_v48 = vadd.f32 %v533_v46, %v133_v45  ;;  %v554_v45 = vld [vmem:[%s5633_s1 + $0x478] sm:$0x3f] }
 0x2a5   :  { %1332 = vst.msk [vmem:[%s5634_s2 + $0x3b8] sm:$0x3f] %vm1213_vm1, %v930_v39 }
 0x2ac   :  { %v134_v49 = vld [vmem:[%s5632_s0 + $0x3d8] sm:$0x3f]  ;;  %v135_v51 = vld [vmem:[%s5632_s0 + $0x3e0] sm:$0xff] }
 0x2ad   :  { %1333 = vst.msk [vmem:[%s5634_s2 + $0x3c0] sm:$0xff] %vm1211_vm0, %v931_v43  ;;  %v934_v52 = vadd.f32 %v534_v50, %v134_v49  ;;  %v935_v56 = vadd.f32 %v535_v53, %v135_v51  ;;  %v553_v43 = vld [vmem:[%s5633_s1 + $0x470] sm:$0xff]  ;;  %v555_v49 = vld [vmem:[%s5633_s1 + $0x480] sm:$0xff] }
 0x2b4   :  { %v136_v54 = vld [vmem:[%s5632_s0 + $0x3e8] sm:$0x3f] }
 0x2b5   :  { %1334 = vst.msk [vmem:[%s5634_s2 + $0x3c8] sm:$0x3f] %vm1213_vm1, %v932_v47  ;;  %v936_v57 = vadd.f32 %v536_v55, %v136_v54  ;;  %v557_v54 = vld [vmem:[%s5633_s1 + $0x490] sm:$0xff] }
 0x2b6   :  { %1335 = vst.msk [vmem:[%s5634_s2 + $0x3d0] sm:$0xff] %vm1211_vm0, %v933_v48 }
 0x2bd   :  { %v137_v58 = vld [vmem:[%s5632_s0 + $0x3f0] sm:$0xff]  ;;  %v138_v60 = vld [vmem:[%s5632_s0 + $0x3f8] sm:$0x3f] }
 0x2be   :  { %1336 = vst.msk [vmem:[%s5634_s2 + $0x3d8] sm:$0x3f] %vm1213_vm1, %v934_v52  ;;  %v937_v61 = vadd.f32 %v537_v59, %v137_v58  ;;  %v938_v1 = vadd.f32 %v538_v62, %v138_v60  ;;  %v556_v52 = vld [vmem:[%s5633_s1 + $0x488] sm:$0x3f]  ;;  %v558_v58 = vld [vmem:[%s5633_s1 + $0x498] sm:$0x3f] }
 0x2c5   :  { %v139_v63 = vld [vmem:[%s5632_s0 + $0x400] sm:$0xff] }
 0x2c6   :  { %1337 = vst.msk [vmem:[%s5634_s2 + $0x3e0] sm:$0xff] %vm1211_vm0, %v935_v56  ;;  %v939_v2 = vadd.f32 %v539_v0, %v139_v63  ;;  %v560_v63 = vld [vmem:[%s5633_s1 + $0x4a8] sm:$0x3f] }
 0x2c7   :  { %1338 = vst.msk [vmem:[%s5634_s2 + $0x3e8] sm:$0x3f] %vm1213_vm1, %v936_v57 }
 0x2ce   :  { %v140_v3 = vld [vmem:[%s5632_s0 + $0x408] sm:$0x3f]  ;;  %v141_v5 = vld [vmem:[%s5632_s0 + $0x410] sm:$0xff] }
 0x2cf   :  { %1339 = vst.msk [vmem:[%s5634_s2 + $0x3f0] sm:$0xff] %vm1211_vm0, %v937_v61  ;;  %v940_v6 = vadd.f32 %v540_v4, %v140_v3  ;;  %v941_v10 = vadd.f32 %v541_v7, %v141_v5  ;;  %v559_v61 = vld [vmem:[%s5633_s1 + $0x4a0] sm:$0xff]  ;;  %v561_v3 = vld [vmem:[%s5633_s1 + $0x4b0] sm:$0xff] }
 0x2d6   :  { %v142_v8 = vld [vmem:[%s5632_s0 + $0x418] sm:$0x3f] }
 0x2d7   :  { %1340 = vst.msk [vmem:[%s5634_s2 + $0x3f8] sm:$0x3f] %vm1213_vm1, %v938_v1  ;;  %v942_v11 = vadd.f32 %v542_v9, %v142_v8  ;;  %v563_v8 = vld [vmem:[%s5633_s1 + $0x4c0] sm:$0xff] }
 0x2d8   :  { %1341 = vst.msk [vmem:[%s5634_s2 + $0x400] sm:$0xff] %vm1211_vm0, %v939_v2 }
 0x2df   :  { %v143_v12 = vld [vmem:[%s5632_s0 + $0x420] sm:$0xff]  ;;  %v144_v14 = vld [vmem:[%s5632_s0 + $0x428] sm:$0x3f] }
 0x2e0   :  { %1342 = vst.msk [vmem:[%s5634_s2 + $0x408] sm:$0x3f] %vm1213_vm1, %v940_v6  ;;  %v943_v15 = vadd.f32 %v543_v13, %v143_v12  ;;  %v944_v19 = vadd.f32 %v544_v16, %v144_v14  ;;  %v562_v6 = vld [vmem:[%s5633_s1 + $0x4b8] sm:$0x3f]  ;;  %v564_v12 = vld [vmem:[%s5633_s1 + $0x4c8] sm:$0x3f] }
 0x2e7   :  { %v145_v17 = vld [vmem:[%s5632_s0 + $0x430] sm:$0xff] }
 0x2e8   :  { %1343 = vst.msk [vmem:[%s5634_s2 + $0x410] sm:$0xff] %vm1211_vm0, %v941_v10  ;;  %v945_v20 = vadd.f32 %v545_v18, %v145_v17  ;;  %v566_v17 = vld [vmem:[%s5633_s1 + $0x4d8] sm:$0x3f] }
 0x2e9   :  { %1344 = vst.msk [vmem:[%s5634_s2 + $0x418] sm:$0x3f] %vm1213_vm1, %v942_v11 }
 0x2f0   :  { %v146_v21 = vld [vmem:[%s5632_s0 + $0x438] sm:$0x3f]  ;;  %v147_v23 = vld [vmem:[%s5632_s0 + $0x440] sm:$0xff] }
 0x2f1   :  { %1345 = vst.msk [vmem:[%s5634_s2 + $0x420] sm:$0xff] %vm1211_vm0, %v943_v15  ;;  %v946_v24 = vadd.f32 %v546_v22, %v146_v21  ;;  %v947_v28 = vadd.f32 %v547_v25, %v147_v23  ;;  %v565_v15 = vld [vmem:[%s5633_s1 + $0x4d0] sm:$0xff]  ;;  %v567_v21 = vld [vmem:[%s5633_s1 + $0x4e0] sm:$0xff] }
 0x2f8   :  { %v148_v26 = vld [vmem:[%s5632_s0 + $0x448] sm:$0x3f] }
 0x2f9   :  { %1346 = vst.msk [vmem:[%s5634_s2 + $0x428] sm:$0x3f] %vm1213_vm1, %v944_v19  ;;  %v948_v29 = vadd.f32 %v548_v27, %v148_v26  ;;  %v569_v26 = vld [vmem:[%s5633_s1 + $0x4f0] sm:$0xff] }
 0x2fa   :  { %1347 = vst.msk [vmem:[%s5634_s2 + $0x430] sm:$0xff] %vm1211_vm0, %v945_v20 }
 0x301   :  { %v149_v30 = vld [vmem:[%s5632_s0 + $0x450] sm:$0xff]  ;;  %v150_v32 = vld [vmem:[%s5632_s0 + $0x458] sm:$0x3f] }
 0x302   :  { %1348 = vst.msk [vmem:[%s5634_s2 + $0x438] sm:$0x3f] %vm1213_vm1, %v946_v24  ;;  %v949_v33 = vadd.f32 %v549_v31, %v149_v30  ;;  %v950_v37 = vadd.f32 %v550_v34, %v150_v32  ;;  %v568_v24 = vld [vmem:[%s5633_s1 + $0x4e8] sm:$0x3f]  ;;  %v570_v30 = vld [vmem:[%s5633_s1 + $0x4f8] sm:$0x3f] }
 0x309   :  { %v151_v35 = vld [vmem:[%s5632_s0 + $0x460] sm:$0xff] }
 0x30a   :  { %1349 = vst.msk [vmem:[%s5634_s2 + $0x440] sm:$0xff] %vm1211_vm0, %v947_v28  ;;  %v951_v38 = vadd.f32 %v551_v36, %v151_v35  ;;  %v572_v35 = vld [vmem:[%s5633_s1 + $0x508] sm:$0x3f] }
 0x30b   :  { %1350 = vst.msk [vmem:[%s5634_s2 + $0x448] sm:$0x3f] %vm1213_vm1, %v948_v29 }
 0x312   :  { %v152_v39 = vld [vmem:[%s5632_s0 + $0x468] sm:$0x3f]  ;;  %v153_v41 = vld [vmem:[%s5632_s0 + $0x470] sm:$0xff] }
 0x313   :  { %1351 = vst.msk [vmem:[%s5634_s2 + $0x450] sm:$0xff] %vm1211_vm0, %v949_v33  ;;  %v952_v42 = vadd.f32 %v552_v40, %v152_v39  ;;  %v953_v46 = vadd.f32 %v553_v43, %v153_v41  ;;  %v571_v33 = vld [vmem:[%s5633_s1 + $0x500] sm:$0xff]  ;;  %v573_v39 = vld [vmem:[%s5633_s1 + $0x510] sm:$0xff] }
 0x31a   :  { %v154_v44 = vld [vmem:[%s5632_s0 + $0x478] sm:$0x3f] }
 0x31b   :  { %1352 = vst.msk [vmem:[%s5634_s2 + $0x458] sm:$0x3f] %vm1213_vm1, %v950_v37  ;;  %v954_v47 = vadd.f32 %v554_v45, %v154_v44  ;;  %v575_v44 = vld [vmem:[%s5633_s1 + $0x520] sm:$0xff] }
 0x31c   :  { %1353 = vst.msk [vmem:[%s5634_s2 + $0x460] sm:$0xff] %vm1211_vm0, %v951_v38 }
 0x323   :  { %v155_v48 = vld [vmem:[%s5632_s0 + $0x480] sm:$0xff]  ;;  %v156_v50 = vld [vmem:[%s5632_s0 + $0x488] sm:$0x3f] }
 0x324   :  { %1354 = vst.msk [vmem:[%s5634_s2 + $0x468] sm:$0x3f] %vm1213_vm1, %v952_v42  ;;  %v955_v51 = vadd.f32 %v555_v49, %v155_v48  ;;  %v956_v55 = vadd.f32 %v556_v52, %v156_v50  ;;  %v574_v42 = vld [vmem:[%s5633_s1 + $0x518] sm:$0x3f]  ;;  %v576_v48 = vld [vmem:[%s5633_s1 + $0x528] sm:$0x3f] }
 0x32b   :  { %v157_v53 = vld [vmem:[%s5632_s0 + $0x490] sm:$0xff] }
 0x32c   :  { %1355 = vst.msk [vmem:[%s5634_s2 + $0x470] sm:$0xff] %vm1211_vm0, %v953_v46  ;;  %v957_v56 = vadd.f32 %v557_v54, %v157_v53  ;;  %v578_v53 = vld [vmem:[%s5633_s1 + $0x538] sm:$0x3f] }
 0x32d   :  { %1356 = vst.msk [vmem:[%s5634_s2 + $0x478] sm:$0x3f] %vm1213_vm1, %v954_v47 }
 0x334   :  { %v158_v57 = vld [vmem:[%s5632_s0 + $0x498] sm:$0x3f]  ;;  %v159_v59 = vld [vmem:[%s5632_s0 + $0x4a0] sm:$0xff] }
 0x335   :  { %1357 = vst.msk [vmem:[%s5634_s2 + $0x480] sm:$0xff] %vm1211_vm0, %v955_v51  ;;  %v958_v60 = vadd.f32 %v558_v58, %v158_v57  ;;  %v959_v0 = vadd.f32 %v559_v61, %v159_v59  ;;  %v577_v51 = vld [vmem:[%s5633_s1 + $0x530] sm:$0xff]  ;;  %v579_v57 = vld [vmem:[%s5633_s1 + $0x540] sm:$0xff] }
 0x33c   :  { %v160_v62 = vld [vmem:[%s5632_s0 + $0x4a8] sm:$0x3f] }
 0x33d   :  { %1358 = vst.msk [vmem:[%s5634_s2 + $0x488] sm:$0x3f] %vm1213_vm1, %v956_v55  ;;  %v960_v1 = vadd.f32 %v560_v63, %v160_v62  ;;  %v581_v62 = vld [vmem:[%s5633_s1 + $0x550] sm:$0xff] }
 0x33e   :  { %1359 = vst.msk [vmem:[%s5634_s2 + $0x490] sm:$0xff] %vm1211_vm0, %v957_v56 }
 0x345   :  { %v161_v2 = vld [vmem:[%s5632_s0 + $0x4b0] sm:$0xff]  ;;  %v162_v4 = vld [vmem:[%s5632_s0 + $0x4b8] sm:$0x3f] }
 0x346   :  { %1360 = vst.msk [vmem:[%s5634_s2 + $0x498] sm:$0x3f] %vm1213_vm1, %v958_v60  ;;  %v961_v5 = vadd.f32 %v561_v3, %v161_v2  ;;  %v962_v9 = vadd.f32 %v562_v6, %v162_v4  ;;  %v580_v60 = vld [vmem:[%s5633_s1 + $0x548] sm:$0x3f]  ;;  %v582_v2 = vld [vmem:[%s5633_s1 + $0x558] sm:$0x3f] }
 0x34d   :  { %v163_v7 = vld [vmem:[%s5632_s0 + $0x4c0] sm:$0xff] }
 0x34e   :  { %1361 = vst.msk [vmem:[%s5634_s2 + $0x4a0] sm:$0xff] %vm1211_vm0, %v959_v0  ;;  %v963_v10 = vadd.f32 %v563_v8, %v163_v7  ;;  %v584_v7 = vld [vmem:[%s5633_s1 + $0x568] sm:$0x3f] }
 0x34f   :  { %1362 = vst.msk [vmem:[%s5634_s2 + $0x4a8] sm:$0x3f] %vm1213_vm1, %v960_v1 }
 0x356   :  { %v164_v11 = vld [vmem:[%s5632_s0 + $0x4c8] sm:$0x3f]  ;;  %v165_v13 = vld [vmem:[%s5632_s0 + $0x4d0] sm:$0xff] }
 0x357   :  { %1363 = vst.msk [vmem:[%s5634_s2 + $0x4b0] sm:$0xff] %vm1211_vm0, %v961_v5  ;;  %v964_v14 = vadd.f32 %v564_v12, %v164_v11  ;;  %v965_v18 = vadd.f32 %v565_v15, %v165_v13  ;;  %v583_v5 = vld [vmem:[%s5633_s1 + $0x560] sm:$0xff]  ;;  %v585_v11 = vld [vmem:[%s5633_s1 + $0x570] sm:$0xff] }
 0x35e   :  { %v166_v16 = vld [vmem:[%s5632_s0 + $0x4d8] sm:$0x3f] }
 0x35f   :  { %1364 = vst.msk [vmem:[%s5634_s2 + $0x4b8] sm:$0x3f] %vm1213_vm1, %v962_v9  ;;  %v966_v19 = vadd.f32 %v566_v17, %v166_v16  ;;  %v587_v16 = vld [vmem:[%s5633_s1 + $0x580] sm:$0xff] }
 0x360   :  { %1365 = vst.msk [vmem:[%s5634_s2 + $0x4c0] sm:$0xff] %vm1211_vm0, %v963_v10 }
 0x367   :  { %v167_v20 = vld [vmem:[%s5632_s0 + $0x4e0] sm:$0xff]  ;;  %v168_v22 = vld [vmem:[%s5632_s0 + $0x4e8] sm:$0x3f] }
 0x368   :  { %1366 = vst.msk [vmem:[%s5634_s2 + $0x4c8] sm:$0x3f] %vm1213_vm1, %v964_v14  ;;  %v967_v23 = vadd.f32 %v567_v21, %v167_v20  ;;  %v968_v27 = vadd.f32 %v568_v24, %v168_v22  ;;  %v586_v14 = vld [vmem:[%s5633_s1 + $0x578] sm:$0x3f]  ;;  %v588_v20 = vld [vmem:[%s5633_s1 + $0x588] sm:$0x3f] }
 0x36f   :  { %v169_v25 = vld [vmem:[%s5632_s0 + $0x4f0] sm:$0xff] }
 0x370   :  { %1367 = vst.msk [vmem:[%s5634_s2 + $0x4d0] sm:$0xff] %vm1211_vm0, %v965_v18  ;;  %v969_v28 = vadd.f32 %v569_v26, %v169_v25  ;;  %v590_v25 = vld [vmem:[%s5633_s1 + $0x598] sm:$0x3f] }
 0x371   :  { %1368 = vst.msk [vmem:[%s5634_s2 + $0x4d8] sm:$0x3f] %vm1213_vm1, %v966_v19 }
 0x378   :  { %v170_v29 = vld [vmem:[%s5632_s0 + $0x4f8] sm:$0x3f]  ;;  %v171_v31 = vld [vmem:[%s5632_s0 + $0x500] sm:$0xff] }
 0x379   :  { %1369 = vst.msk [vmem:[%s5634_s2 + $0x4e0] sm:$0xff] %vm1211_vm0, %v967_v23  ;;  %v970_v32 = vadd.f32 %v570_v30, %v170_v29  ;;  %v971_v36 = vadd.f32 %v571_v33, %v171_v31  ;;  %v589_v23 = vld [vmem:[%s5633_s1 + $0x590] sm:$0xff]  ;;  %v591_v29 = vld [vmem:[%s5633_s1 + $0x5a0] sm:$0xff] }
 0x380   :  { %v172_v34 = vld [vmem:[%s5632_s0 + $0x508] sm:$0x3f] }
 0x381   :  { %1370 = vst.msk [vmem:[%s5634_s2 + $0x4e8] sm:$0x3f] %vm1213_vm1, %v968_v27  ;;  %v972_v37 = vadd.f32 %v572_v35, %v172_v34  ;;  %v593_v34 = vld [vmem:[%s5633_s1 + $0x5b0] sm:$0xff] }
 0x382   :  { %1371 = vst.msk [vmem:[%s5634_s2 + $0x4f0] sm:$0xff] %vm1211_vm0, %v969_v28 }
 0x389   :  { %v173_v38 = vld [vmem:[%s5632_s0 + $0x510] sm:$0xff]  ;;  %v174_v40 = vld [vmem:[%s5632_s0 + $0x518] sm:$0x3f] }
 0x38a   :  { %1372 = vst.msk [vmem:[%s5634_s2 + $0x4f8] sm:$0x3f] %vm1213_vm1, %v970_v32  ;;  %v973_v41 = vadd.f32 %v573_v39, %v173_v38  ;;  %v974_v45 = vadd.f32 %v574_v42, %v174_v40  ;;  %v592_v32 = vld [vmem:[%s5633_s1 + $0x5a8] sm:$0x3f]  ;;  %v594_v38 = vld [vmem:[%s5633_s1 + $0x5b8] sm:$0x3f] }
 0x391   :  { %v175_v43 = vld [vmem:[%s5632_s0 + $0x520] sm:$0xff] }
 0x392   :  { %1373 = vst.msk [vmem:[%s5634_s2 + $0x500] sm:$0xff] %vm1211_vm0, %v971_v36  ;;  %v975_v46 = vadd.f32 %v575_v44, %v175_v43  ;;  %v596_v43 = vld [vmem:[%s5633_s1 + $0x5c8] sm:$0x3f] }
 0x393   :  { %1374 = vst.msk [vmem:[%s5634_s2 + $0x508] sm:$0x3f] %vm1213_vm1, %v972_v37 }
 0x39a   :  { %v176_v47 = vld [vmem:[%s5632_s0 + $0x528] sm:$0x3f]  ;;  %v177_v49 = vld [vmem:[%s5632_s0 + $0x530] sm:$0xff] }
 0x39b   :  { %1375 = vst.msk [vmem:[%s5634_s2 + $0x510] sm:$0xff] %vm1211_vm0, %v973_v41  ;;  %v976_v50 = vadd.f32 %v576_v48, %v176_v47  ;;  %v977_v54 = vadd.f32 %v577_v51, %v177_v49  ;;  %v595_v41 = vld [vmem:[%s5633_s1 + $0x5c0] sm:$0xff]  ;;  %v597_v47 = vld [vmem:[%s5633_s1 + $0x5d0] sm:$0xff] }
 0x3a2   :  { %v178_v52 = vld [vmem:[%s5632_s0 + $0x538] sm:$0x3f] }
 0x3a3   :  { %1376 = vst.msk [vmem:[%s5634_s2 + $0x518] sm:$0x3f] %vm1213_vm1, %v974_v45  ;;  %v978_v55 = vadd.f32 %v578_v53, %v178_v52  ;;  %v599_v52 = vld [vmem:[%s5633_s1 + $0x5e0] sm:$0xff] }
 0x3a4   :  { %1377 = vst.msk [vmem:[%s5634_s2 + $0x520] sm:$0xff] %vm1211_vm0, %v975_v46 }
 0x3ab   :  { %v179_v56 = vld [vmem:[%s5632_s0 + $0x540] sm:$0xff]  ;;  %v180_v58 = vld [vmem:[%s5632_s0 + $0x548] sm:$0x3f] }
 0x3ac   :  { %1378 = vst.msk [vmem:[%s5634_s2 + $0x528] sm:$0x3f] %vm1213_vm1, %v976_v50  ;;  %v979_v59 = vadd.f32 %v579_v57, %v179_v56  ;;  %v980_v63 = vadd.f32 %v580_v60, %v180_v58  ;;  %v598_v50 = vld [vmem:[%s5633_s1 + $0x5d8] sm:$0x3f]  ;;  %v600_v56 = vld [vmem:[%s5633_s1 + $0x5e8] sm:$0x3f] }
 0x3b3   :  { %v181_v61 = vld [vmem:[%s5632_s0 + $0x550] sm:$0xff] }
 0x3b4   :  { %1379 = vst.msk [vmem:[%s5634_s2 + $0x530] sm:$0xff] %vm1211_vm0, %v977_v54  ;;  %v981_v0 = vadd.f32 %v581_v62, %v181_v61  ;;  %v602_v61 = vld [vmem:[%s5633_s1 + $0x5f8] sm:$0x3f] }
 0x3b5   :  { %1380 = vst.msk [vmem:[%s5634_s2 + $0x538] sm:$0x3f] %vm1213_vm1, %v978_v55 }
 0x3bc   :  { %v182_v1 = vld [vmem:[%s5632_s0 + $0x558] sm:$0x3f]  ;;  %v183_v3 = vld [vmem:[%s5632_s0 + $0x560] sm:$0xff] }
 0x3bd   :  { %1381 = vst.msk [vmem:[%s5634_s2 + $0x540] sm:$0xff] %vm1211_vm0, %v979_v59  ;;  %v982_v4 = vadd.f32 %v582_v2, %v182_v1  ;;  %v983_v8 = vadd.f32 %v583_v5, %v183_v3  ;;  %v601_v59 = vld [vmem:[%s5633_s1 + $0x5f0] sm:$0xff]  ;;  %v603_v1 = vld [vmem:[%s5633_s1 + $0x600] sm:$0xff] }
 0x3c4   :  { %v184_v6 = vld [vmem:[%s5632_s0 + $0x568] sm:$0x3f] }
 0x3c5   :  { %1382 = vst.msk [vmem:[%s5634_s2 + $0x548] sm:$0x3f] %vm1213_vm1, %v980_v63  ;;  %v984_v9 = vadd.f32 %v584_v7, %v184_v6  ;;  %v605_v6 = vld [vmem:[%s5633_s1 + $0x610] sm:$0xff] }
 0x3c6   :  { %1383 = vst.msk [vmem:[%s5634_s2 + $0x550] sm:$0xff] %vm1211_vm0, %v981_v0 }
 0x3cd   :  { %v185_v10 = vld [vmem:[%s5632_s0 + $0x570] sm:$0xff]  ;;  %v186_v12 = vld [vmem:[%s5632_s0 + $0x578] sm:$0x3f] }
 0x3ce   :  { %1384 = vst.msk [vmem:[%s5634_s2 + $0x558] sm:$0x3f] %vm1213_vm1, %v982_v4  ;;  %v985_v13 = vadd.f32 %v585_v11, %v185_v10  ;;  %v986_v17 = vadd.f32 %v586_v14, %v186_v12  ;;  %v604_v4 = vld [vmem:[%s5633_s1 + $0x608] sm:$0x3f]  ;;  %v606_v10 = vld [vmem:[%s5633_s1 + $0x618] sm:$0x3f] }
 0x3d5   :  { %v187_v15 = vld [vmem:[%s5632_s0 + $0x580] sm:$0xff] }
 0x3d6   :  { %1385 = vst.msk [vmem:[%s5634_s2 + $0x560] sm:$0xff] %vm1211_vm0, %v983_v8  ;;  %v987_v18 = vadd.f32 %v587_v16, %v187_v15  ;;  %v608_v15 = vld [vmem:[%s5633_s1 + $0x628] sm:$0x3f] }
 0x3d7   :  { %1386 = vst.msk [vmem:[%s5634_s2 + $0x568] sm:$0x3f] %vm1213_vm1, %v984_v9 }
 0x3de   :  { %v188_v19 = vld [vmem:[%s5632_s0 + $0x588] sm:$0x3f]  ;;  %v189_v21 = vld [vmem:[%s5632_s0 + $0x590] sm:$0xff] }
 0x3df   :  { %1387 = vst.msk [vmem:[%s5634_s2 + $0x570] sm:$0xff] %vm1211_vm0, %v985_v13  ;;  %v988_v22 = vadd.f32 %v588_v20, %v188_v19  ;;  %v989_v26 = vadd.f32 %v589_v23, %v189_v21  ;;  %v607_v13 = vld [vmem:[%s5633_s1 + $0x620] sm:$0xff]  ;;  %v609_v19 = vld [vmem:[%s5633_s1 + $0x630] sm:$0xff] }
 0x3e6   :  { %v190_v24 = vld [vmem:[%s5632_s0 + $0x598] sm:$0x3f] }
 0x3e7   :  { %1388 = vst.msk [vmem:[%s5634_s2 + $0x578] sm:$0x3f] %vm1213_vm1, %v986_v17  ;;  %v990_v27 = vadd.f32 %v590_v25, %v190_v24  ;;  %v611_v24 = vld [vmem:[%s5633_s1 + $0x640] sm:$0xff] }
 0x3e8   :  { %1389 = vst.msk [vmem:[%s5634_s2 + $0x580] sm:$0xff] %vm1211_vm0, %v987_v18 }
 0x3ef   :  { %v191_v28 = vld [vmem:[%s5632_s0 + $0x5a0] sm:$0xff]  ;;  %v192_v30 = vld [vmem:[%s5632_s0 + $0x5a8] sm:$0x3f] }
 0x3f0   :  { %1390 = vst.msk [vmem:[%s5634_s2 + $0x588] sm:$0x3f] %vm1213_vm1, %v988_v22  ;;  %v991_v31 = vadd.f32 %v591_v29, %v191_v28  ;;  %v992_v35 = vadd.f32 %v592_v32, %v192_v30  ;;  %v610_v22 = vld [vmem:[%s5633_s1 + $0x638] sm:$0x3f]  ;;  %v612_v28 = vld [vmem:[%s5633_s1 + $0x648] sm:$0x3f] }
 0x3f7   :  { %v193_v33 = vld [vmem:[%s5632_s0 + $0x5b0] sm:$0xff] }
 0x3f8   :  { %1391 = vst.msk [vmem:[%s5634_s2 + $0x590] sm:$0xff] %vm1211_vm0, %v989_v26  ;;  %v993_v36 = vadd.f32 %v593_v34, %v193_v33  ;;  %v614_v33 = vld [vmem:[%s5633_s1 + $0x658] sm:$0x3f] }
 0x3f9   :  { %1392 = vst.msk [vmem:[%s5634_s2 + $0x598] sm:$0x3f] %vm1213_vm1, %v990_v27 }
 0x400   :  { %v194_v37 = vld [vmem:[%s5632_s0 + $0x5b8] sm:$0x3f]  ;;  %v195_v39 = vld [vmem:[%s5632_s0 + $0x5c0] sm:$0xff] }
 0x401   :  { %1393 = vst.msk [vmem:[%s5634_s2 + $0x5a0] sm:$0xff] %vm1211_vm0, %v991_v31  ;;  %v994_v40 = vadd.f32 %v594_v38, %v194_v37  ;;  %v995_v44 = vadd.f32 %v595_v41, %v195_v39  ;;  %v613_v31 = vld [vmem:[%s5633_s1 + $0x650] sm:$0xff]  ;;  %v615_v37 = vld [vmem:[%s5633_s1 + $0x660] sm:$0xff] }
 0x408   :  { %v196_v42 = vld [vmem:[%s5632_s0 + $0x5c8] sm:$0x3f] }
 0x409   :  { %1394 = vst.msk [vmem:[%s5634_s2 + $0x5a8] sm:$0x3f] %vm1213_vm1, %v992_v35  ;;  %v996_v45 = vadd.f32 %v596_v43, %v196_v42  ;;  %v617_v42 = vld [vmem:[%s5633_s1 + $0x670] sm:$0xff] }
 0x40a   :  { %1395 = vst.msk [vmem:[%s5634_s2 + $0x5b0] sm:$0xff] %vm1211_vm0, %v993_v36 }
 0x411   :  { %v197_v46 = vld [vmem:[%s5632_s0 + $0x5d0] sm:$0xff]  ;;  %v198_v48 = vld [vmem:[%s5632_s0 + $0x5d8] sm:$0x3f] }
 0x412   :  { %1396 = vst.msk [vmem:[%s5634_s2 + $0x5b8] sm:$0x3f] %vm1213_vm1, %v994_v40  ;;  %v997_v49 = vadd.f32 %v597_v47, %v197_v46  ;;  %v998_v53 = vadd.f32 %v598_v50, %v198_v48  ;;  %v616_v40 = vld [vmem:[%s5633_s1 + $0x668] sm:$0x3f]  ;;  %v618_v46 = vld [vmem:[%s5633_s1 + $0x678] sm:$0x3f] }
 0x419   :  { %v199_v51 = vld [vmem:[%s5632_s0 + $0x5e0] sm:$0xff] }
 0x41a   :  { %1397 = vst.msk [vmem:[%s5634_s2 + $0x5c0] sm:$0xff] %vm1211_vm0, %v995_v44  ;;  %v999_v54 = vadd.f32 %v599_v52, %v199_v51  ;;  %v620_v51 = vld [vmem:[%s5633_s1 + $0x688] sm:$0x3f] }
 0x41b   :  { %1398 = vst.msk [vmem:[%s5634_s2 + $0x5c8] sm:$0x3f] %vm1213_vm1, %v996_v45 }
 0x422   :  { %v200_v55 = vld [vmem:[%s5632_s0 + $0x5e8] sm:$0x3f]  ;;  %v201_v57 = vld [vmem:[%s5632_s0 + $0x5f0] sm:$0xff] }
 0x423   :  { %1399 = vst.msk [vmem:[%s5634_s2 + $0x5d0] sm:$0xff] %vm1211_vm0, %v997_v49  ;;  %v1000_v58 = vadd.f32 %v600_v56, %v200_v55  ;;  %v1001_v62 = vadd.f32 %v601_v59, %v201_v57  ;;  %v619_v49 = vld [vmem:[%s5633_s1 + $0x680] sm:$0xff]  ;;  %v621_v55 = vld [vmem:[%s5633_s1 + $0x690] sm:$0xff] }
 0x42a   :  { %v202_v60 = vld [vmem:[%s5632_s0 + $0x5f8] sm:$0x3f] }
 0x42b   :  { %1400 = vst.msk [vmem:[%s5634_s2 + $0x5d8] sm:$0x3f] %vm1213_vm1, %v998_v53  ;;  %v1002_v63 = vadd.f32 %v602_v61, %v202_v60  ;;  %v623_v60 = vld [vmem:[%s5633_s1 + $0x6a0] sm:$0xff] }
 0x42c   :  { %1401 = vst.msk [vmem:[%s5634_s2 + $0x5e0] sm:$0xff] %vm1211_vm0, %v999_v54 }
 0x433   :  { %v203_v0 = vld [vmem:[%s5632_s0 + $0x600] sm:$0xff]  ;;  %v204_v2 = vld [vmem:[%s5632_s0 + $0x608] sm:$0x3f] }
 0x434   :  { %1402 = vst.msk [vmem:[%s5634_s2 + $0x5e8] sm:$0x3f] %vm1213_vm1, %v1000_v58  ;;  %v1003_v3 = vadd.f32 %v603_v1, %v203_v0  ;;  %v1004_v7 = vadd.f32 %v604_v4, %v204_v2  ;;  %v622_v58 = vld [vmem:[%s5633_s1 + $0x698] sm:$0x3f]  ;;  %v624_v0 = vld [vmem:[%s5633_s1 + $0x6a8] sm:$0x3f] }
 0x43b   :  { %v205_v5 = vld [vmem:[%s5632_s0 + $0x610] sm:$0xff] }
 0x43c   :  { %1403 = vst.msk [vmem:[%s5634_s2 + $0x5f0] sm:$0xff] %vm1211_vm0, %v1001_v62  ;;  %v1005_v8 = vadd.f32 %v605_v6, %v205_v5  ;;  %v626_v5 = vld [vmem:[%s5633_s1 + $0x6b8] sm:$0x3f] }
 0x43d   :  { %1404 = vst.msk [vmem:[%s5634_s2 + $0x5f8] sm:$0x3f] %vm1213_vm1, %v1002_v63 }
 0x444   :  { %v206_v9 = vld [vmem:[%s5632_s0 + $0x618] sm:$0x3f]  ;;  %v207_v11 = vld [vmem:[%s5632_s0 + $0x620] sm:$0xff] }
 0x445   :  { %1405 = vst.msk [vmem:[%s5634_s2 + $0x600] sm:$0xff] %vm1211_vm0, %v1003_v3  ;;  %v1006_v12 = vadd.f32 %v606_v10, %v206_v9  ;;  %v1007_v16 = vadd.f32 %v607_v13, %v207_v11  ;;  %v625_v3 = vld [vmem:[%s5633_s1 + $0x6b0] sm:$0xff]  ;;  %v627_v9 = vld [vmem:[%s5633_s1 + $0x6c0] sm:$0xff] }
 0x44c   :  { %v208_v14 = vld [vmem:[%s5632_s0 + $0x628] sm:$0x3f] }
 0x44d   :  { %1406 = vst.msk [vmem:[%s5634_s2 + $0x608] sm:$0x3f] %vm1213_vm1, %v1004_v7  ;;  %v1008_v17 = vadd.f32 %v608_v15, %v208_v14  ;;  %v629_v14 = vld [vmem:[%s5633_s1 + $0x6d0] sm:$0xff] }
 0x44e   :  { %1407 = vst.msk [vmem:[%s5634_s2 + $0x610] sm:$0xff] %vm1211_vm0, %v1005_v8 }
 0x455   :  { %v209_v18 = vld [vmem:[%s5632_s0 + $0x630] sm:$0xff]  ;;  %v210_v20 = vld [vmem:[%s5632_s0 + $0x638] sm:$0x3f] }
 0x456   :  { %1408 = vst.msk [vmem:[%s5634_s2 + $0x618] sm:$0x3f] %vm1213_vm1, %v1006_v12  ;;  %v1009_v21 = vadd.f32 %v609_v19, %v209_v18  ;;  %v1010_v25 = vadd.f32 %v610_v22, %v210_v20  ;;  %v628_v12 = vld [vmem:[%s5633_s1 + $0x6c8] sm:$0x3f]  ;;  %v630_v18 = vld [vmem:[%s5633_s1 + $0x6d8] sm:$0x3f] }
 0x45d   :  { %v211_v23 = vld [vmem:[%s5632_s0 + $0x640] sm:$0xff] }
 0x45e   :  { %1409 = vst.msk [vmem:[%s5634_s2 + $0x620] sm:$0xff] %vm1211_vm0, %v1007_v16  ;;  %v1011_v26 = vadd.f32 %v611_v24, %v211_v23  ;;  %v632_v23 = vld [vmem:[%s5633_s1 + $0x6e8] sm:$0x3f] }
 0x45f   :  { %1410 = vst.msk [vmem:[%s5634_s2 + $0x628] sm:$0x3f] %vm1213_vm1, %v1008_v17 }
 0x466   :  { %v212_v27 = vld [vmem:[%s5632_s0 + $0x648] sm:$0x3f]  ;;  %v213_v29 = vld [vmem:[%s5632_s0 + $0x650] sm:$0xff] }
 0x467   :  { %1411 = vst.msk [vmem:[%s5634_s2 + $0x630] sm:$0xff] %vm1211_vm0, %v1009_v21  ;;  %v1012_v30 = vadd.f32 %v612_v28, %v212_v27  ;;  %v1013_v34 = vadd.f32 %v613_v31, %v213_v29  ;;  %v631_v21 = vld [vmem:[%s5633_s1 + $0x6e0] sm:$0xff]  ;;  %v633_v27 = vld [vmem:[%s5633_s1 + $0x6f0] sm:$0xff] }
 0x46e   :  { %v214_v32 = vld [vmem:[%s5632_s0 + $0x658] sm:$0x3f] }
 0x46f   :  { %1412 = vst.msk [vmem:[%s5634_s2 + $0x638] sm:$0x3f] %vm1213_vm1, %v1010_v25  ;;  %v1014_v35 = vadd.f32 %v614_v33, %v214_v32  ;;  %v635_v32 = vld [vmem:[%s5633_s1 + $0x700] sm:$0xff] }
 0x470   :  { %1413 = vst.msk [vmem:[%s5634_s2 + $0x640] sm:$0xff] %vm1211_vm0, %v1011_v26 }
 0x477   :  { %v215_v36 = vld [vmem:[%s5632_s0 + $0x660] sm:$0xff]  ;;  %v216_v38 = vld [vmem:[%s5632_s0 + $0x668] sm:$0x3f] }
 0x478   :  { %1414 = vst.msk [vmem:[%s5634_s2 + $0x648] sm:$0x3f] %vm1213_vm1, %v1012_v30  ;;  %v1015_v39 = vadd.f32 %v615_v37, %v215_v36  ;;  %v1016_v43 = vadd.f32 %v616_v40, %v216_v38  ;;  %v634_v30 = vld [vmem:[%s5633_s1 + $0x6f8] sm:$0x3f]  ;;  %v636_v36 = vld [vmem:[%s5633_s1 + $0x708] sm:$0x3f] }
 0x47f   :  { %v217_v41 = vld [vmem:[%s5632_s0 + $0x670] sm:$0xff] }
 0x480   :  { %1415 = vst.msk [vmem:[%s5634_s2 + $0x650] sm:$0xff] %vm1211_vm0, %v1013_v34  ;;  %v1017_v44 = vadd.f32 %v617_v42, %v217_v41  ;;  %v638_v41 = vld [vmem:[%s5633_s1 + $0x718] sm:$0x3f] }
 0x481   :  { %1416 = vst.msk [vmem:[%s5634_s2 + $0x658] sm:$0x3f] %vm1213_vm1, %v1014_v35 }
 0x488   :  { %v218_v45 = vld [vmem:[%s5632_s0 + $0x678] sm:$0x3f]  ;;  %v219_v47 = vld [vmem:[%s5632_s0 + $0x680] sm:$0xff] }
 0x489   :  { %1417 = vst.msk [vmem:[%s5634_s2 + $0x660] sm:$0xff] %vm1211_vm0, %v1015_v39  ;;  %v1018_v48 = vadd.f32 %v618_v46, %v218_v45  ;;  %v1019_v52 = vadd.f32 %v619_v49, %v219_v47  ;;  %v637_v39 = vld [vmem:[%s5633_s1 + $0x710] sm:$0xff]  ;;  %v639_v45 = vld [vmem:[%s5633_s1 + $0x720] sm:$0xff] }
 0x490   :  { %v220_v50 = vld [vmem:[%s5632_s0 + $0x688] sm:$0x3f] }
 0x491   :  { %1418 = vst.msk [vmem:[%s5634_s2 + $0x668] sm:$0x3f] %vm1213_vm1, %v1016_v43  ;;  %v1020_v53 = vadd.f32 %v620_v51, %v220_v50  ;;  %v641_v50 = vld [vmem:[%s5633_s1 + $0x730] sm:$0xff] }
 0x492   :  { %1419 = vst.msk [vmem:[%s5634_s2 + $0x670] sm:$0xff] %vm1211_vm0, %v1017_v44 }
 0x499   :  { %v221_v54 = vld [vmem:[%s5632_s0 + $0x690] sm:$0xff]  ;;  %v222_v56 = vld [vmem:[%s5632_s0 + $0x698] sm:$0x3f] }
 0x49a   :  { %1420 = vst.msk [vmem:[%s5634_s2 + $0x678] sm:$0x3f] %vm1213_vm1, %v1018_v48  ;;  %v1021_v57 = vadd.f32 %v621_v55, %v221_v54  ;;  %v1022_v61 = vadd.f32 %v622_v58, %v222_v56  ;;  %v640_v48 = vld [vmem:[%s5633_s1 + $0x728] sm:$0x3f]  ;;  %v642_v54 = vld [vmem:[%s5633_s1 + $0x738] sm:$0x3f] }
 0x4a1   :  { %v223_v59 = vld [vmem:[%s5632_s0 + $0x6a0] sm:$0xff] }
 0x4a2   :  { %1421 = vst.msk [vmem:[%s5634_s2 + $0x680] sm:$0xff] %vm1211_vm0, %v1019_v52  ;;  %v1023_v62 = vadd.f32 %v623_v60, %v223_v59  ;;  %v644_v59 = vld [vmem:[%s5633_s1 + $0x748] sm:$0x3f] }
 0x4a3   :  { %1422 = vst.msk [vmem:[%s5634_s2 + $0x688] sm:$0x3f] %vm1213_vm1, %v1020_v53 }
 0x4aa   :  { %v224_v63 = vld [vmem:[%s5632_s0 + $0x6a8] sm:$0x3f]  ;;  %v225_v1 = vld [vmem:[%s5632_s0 + $0x6b0] sm:$0xff] }
 0x4ab   :  { %1423 = vst.msk [vmem:[%s5634_s2 + $0x690] sm:$0xff] %vm1211_vm0, %v1021_v57  ;;  %v1024_v2 = vadd.f32 %v624_v0, %v224_v63  ;;  %v1025_v6 = vadd.f32 %v625_v3, %v225_v1  ;;  %v643_v57 = vld [vmem:[%s5633_s1 + $0x740] sm:$0xff]  ;;  %v645_v63 = vld [vmem:[%s5633_s1 + $0x750] sm:$0xff] }
 0x4b2   :  { %v226_v4 = vld [vmem:[%s5632_s0 + $0x6b8] sm:$0x3f] }
 0x4b3   :  { %1424 = vst.msk [vmem:[%s5634_s2 + $0x698] sm:$0x3f] %vm1213_vm1, %v1022_v61  ;;  %v1026_v7 = vadd.f32 %v626_v5, %v226_v4  ;;  %v647_v4 = vld [vmem:[%s5633_s1 + $0x760] sm:$0xff] }
 0x4b4   :  { %1425 = vst.msk [vmem:[%s5634_s2 + $0x6a0] sm:$0xff] %vm1211_vm0, %v1023_v62 }
 0x4bb   :  { %v227_v8 = vld [vmem:[%s5632_s0 + $0x6c0] sm:$0xff]  ;;  %v228_v10 = vld [vmem:[%s5632_s0 + $0x6c8] sm:$0x3f] }
 0x4bc   :  { %1426 = vst.msk [vmem:[%s5634_s2 + $0x6a8] sm:$0x3f] %vm1213_vm1, %v1024_v2  ;;  %v1027_v11 = vadd.f32 %v627_v9, %v227_v8  ;;  %v1028_v15 = vadd.f32 %v628_v12, %v228_v10  ;;  %v646_v2 = vld [vmem:[%s5633_s1 + $0x758] sm:$0x3f]  ;;  %v648_v8 = vld [vmem:[%s5633_s1 + $0x768] sm:$0x3f] }
 0x4c3   :  { %v229_v13 = vld [vmem:[%s5632_s0 + $0x6d0] sm:$0xff] }
 0x4c4   :  { %1427 = vst.msk [vmem:[%s5634_s2 + $0x6b0] sm:$0xff] %vm1211_vm0, %v1025_v6  ;;  %v1029_v16 = vadd.f32 %v629_v14, %v229_v13  ;;  %v650_v13 = vld [vmem:[%s5633_s1 + $0x778] sm:$0x3f] }
 0x4c5   :  { %1428 = vst.msk [vmem:[%s5634_s2 + $0x6b8] sm:$0x3f] %vm1213_vm1, %v1026_v7 }
 0x4cc   :  { %v230_v17 = vld [vmem:[%s5632_s0 + $0x6d8] sm:$0x3f]  ;;  %v231_v19 = vld [vmem:[%s5632_s0 + $0x6e0] sm:$0xff] }
 0x4cd   :  { %1429 = vst.msk [vmem:[%s5634_s2 + $0x6c0] sm:$0xff] %vm1211_vm0, %v1027_v11  ;;  %v1030_v20 = vadd.f32 %v630_v18, %v230_v17  ;;  %v1031_v24 = vadd.f32 %v631_v21, %v231_v19  ;;  %v649_v11 = vld [vmem:[%s5633_s1 + $0x770] sm:$0xff]  ;;  %v651_v17 = vld [vmem:[%s5633_s1 + $0x780] sm:$0xff] }
 0x4d4   :  { %v232_v22 = vld [vmem:[%s5632_s0 + $0x6e8] sm:$0x3f] }
 0x4d5   :  { %1430 = vst.msk [vmem:[%s5634_s2 + $0x6c8] sm:$0x3f] %vm1213_vm1, %v1028_v15  ;;  %v1032_v25 = vadd.f32 %v632_v23, %v232_v22  ;;  %v653_v22 = vld [vmem:[%s5633_s1 + $0x790] sm:$0xff] }
 0x4d6   :  { %1431 = vst.msk [vmem:[%s5634_s2 + $0x6d0] sm:$0xff] %vm1211_vm0, %v1029_v16 }
 0x4dd   :  { %v233_v26 = vld [vmem:[%s5632_s0 + $0x6f0] sm:$0xff]  ;;  %v234_v28 = vld [vmem:[%s5632_s0 + $0x6f8] sm:$0x3f] }
 0x4de   :  { %1432 = vst.msk [vmem:[%s5634_s2 + $0x6d8] sm:$0x3f] %vm1213_vm1, %v1030_v20  ;;  %v1033_v29 = vadd.f32 %v633_v27, %v233_v26  ;;  %v1034_v33 = vadd.f32 %v634_v30, %v234_v28  ;;  %v652_v20 = vld [vmem:[%s5633_s1 + $0x788] sm:$0x3f]  ;;  %v654_v26 = vld [vmem:[%s5633_s1 + $0x798] sm:$0x3f] }
 0x4e5   :  { %v235_v31 = vld [vmem:[%s5632_s0 + $0x700] sm:$0xff] }
 0x4e6   :  { %1433 = vst.msk [vmem:[%s5634_s2 + $0x6e0] sm:$0xff] %vm1211_vm0, %v1031_v24  ;;  %v1035_v34 = vadd.f32 %v635_v32, %v235_v31  ;;  %v656_v31 = vld [vmem:[%s5633_s1 + $0x7a8] sm:$0x3f] }
 0x4e7   :  { %1434 = vst.msk [vmem:[%s5634_s2 + $0x6e8] sm:$0x3f] %vm1213_vm1, %v1032_v25 }
 0x4ee   :  { %v236_v35 = vld [vmem:[%s5632_s0 + $0x708] sm:$0x3f]  ;;  %v237_v37 = vld [vmem:[%s5632_s0 + $0x710] sm:$0xff] }
 0x4ef   :  { %1435 = vst.msk [vmem:[%s5634_s2 + $0x6f0] sm:$0xff] %vm1211_vm0, %v1033_v29  ;;  %v1036_v38 = vadd.f32 %v636_v36, %v236_v35  ;;  %v1037_v42 = vadd.f32 %v637_v39, %v237_v37  ;;  %v655_v29 = vld [vmem:[%s5633_s1 + $0x7a0] sm:$0xff]  ;;  %v657_v35 = vld [vmem:[%s5633_s1 + $0x7b0] sm:$0xff] }
 0x4f6   :  { %v238_v40 = vld [vmem:[%s5632_s0 + $0x718] sm:$0x3f] }
 0x4f7   :  { %1436 = vst.msk [vmem:[%s5634_s2 + $0x6f8] sm:$0x3f] %vm1213_vm1, %v1034_v33  ;;  %v1038_v43 = vadd.f32 %v638_v41, %v238_v40  ;;  %v659_v40 = vld [vmem:[%s5633_s1 + $0x7c0] sm:$0xff] }
 0x4f8   :  { %1437 = vst.msk [vmem:[%s5634_s2 + $0x700] sm:$0xff] %vm1211_vm0, %v1035_v34 }
 0x4ff   :  { %v239_v44 = vld [vmem:[%s5632_s0 + $0x720] sm:$0xff]  ;;  %v240_v46 = vld [vmem:[%s5632_s0 + $0x728] sm:$0x3f] }
 0x500   :  { %1438 = vst.msk [vmem:[%s5634_s2 + $0x708] sm:$0x3f] %vm1213_vm1, %v1036_v38  ;;  %v1039_v47 = vadd.f32 %v639_v45, %v239_v44  ;;  %v1040_v51 = vadd.f32 %v640_v48, %v240_v46  ;;  %v658_v38 = vld [vmem:[%s5633_s1 + $0x7b8] sm:$0x3f]  ;;  %v660_v44 = vld [vmem:[%s5633_s1 + $0x7c8] sm:$0x3f] }
 0x507   :  { %v241_v49 = vld [vmem:[%s5632_s0 + $0x730] sm:$0xff] }
 0x508   :  { %1439 = vst.msk [vmem:[%s5634_s2 + $0x710] sm:$0xff] %vm1211_vm0, %v1037_v42  ;;  %v1041_v52 = vadd.f32 %v641_v50, %v241_v49  ;;  %v662_v49 = vld [vmem:[%s5633_s1 + $0x7d8] sm:$0x3f] }
 0x509   :  { %1440 = vst.msk [vmem:[%s5634_s2 + $0x718] sm:$0x3f] %vm1213_vm1, %v1038_v43 }
 0x510   :  { %v242_v53 = vld [vmem:[%s5632_s0 + $0x738] sm:$0x3f]  ;;  %v243_v55 = vld [vmem:[%s5632_s0 + $0x740] sm:$0xff] }
 0x511   :  { %1441 = vst.msk [vmem:[%s5634_s2 + $0x720] sm:$0xff] %vm1211_vm0, %v1039_v47  ;;  %v1042_v56 = vadd.f32 %v642_v54, %v242_v53  ;;  %v1043_v60 = vadd.f32 %v643_v57, %v243_v55  ;;  %v661_v47 = vld [vmem:[%s5633_s1 + $0x7d0] sm:$0xff]  ;;  %v663_v53 = vld [vmem:[%s5633_s1 + $0x7e0] sm:$0xff] }
 0x518   :  { %v244_v58 = vld [vmem:[%s5632_s0 + $0x748] sm:$0x3f] }
 0x519   :  { %1442 = vst.msk [vmem:[%s5634_s2 + $0x728] sm:$0x3f] %vm1213_vm1, %v1040_v51  ;;  %v1044_v61 = vadd.f32 %v644_v59, %v244_v58  ;;  %v665_v58 = vld [vmem:[%s5633_s1 + $0x7f0] sm:$0xff] }
 0x51a   :  { %1443 = vst.msk [vmem:[%s5634_s2 + $0x730] sm:$0xff] %vm1211_vm0, %v1041_v52 }
 0x521   :  { %v245_v62 = vld [vmem:[%s5632_s0 + $0x750] sm:$0xff]  ;;  %v246_v0 = vld [vmem:[%s5632_s0 + $0x758] sm:$0x3f] }
 0x522   :  { %1444 = vst.msk [vmem:[%s5634_s2 + $0x738] sm:$0x3f] %vm1213_vm1, %v1042_v56  ;;  %v1045_v1 = vadd.f32 %v645_v63, %v245_v62  ;;  %v1046_v5 = vadd.f32 %v646_v2, %v246_v0  ;;  %v664_v56 = vld [vmem:[%s5633_s1 + $0x7e8] sm:$0x3f]  ;;  %v666_v62 = vld [vmem:[%s5633_s1 + $0x7f8] sm:$0x3f] }
 0x529   :  { %v247_v3 = vld [vmem:[%s5632_s0 + $0x760] sm:$0xff] }
 0x52a   :  { %1445 = vst.msk [vmem:[%s5634_s2 + $0x740] sm:$0xff] %vm1211_vm0, %v1043_v60  ;;  %v1047_v6 = vadd.f32 %v647_v4, %v247_v3  ;;  %v668_v3 = vld [vmem:[%s5633_s1 + $0x808] sm:$0x3f] }
 0x52b   :  { %1446 = vst.msk [vmem:[%s5634_s2 + $0x748] sm:$0x3f] %vm1213_vm1, %v1044_v61 }
 0x532   :  { %v248_v7 = vld [vmem:[%s5632_s0 + $0x768] sm:$0x3f]  ;;  %v249_v9 = vld [vmem:[%s5632_s0 + $0x770] sm:$0xff] }
 0x533   :  { %1447 = vst.msk [vmem:[%s5634_s2 + $0x750] sm:$0xff] %vm1211_vm0, %v1045_v1  ;;  %v1048_v10 = vadd.f32 %v648_v8, %v248_v7  ;;  %v1049_v14 = vadd.f32 %v649_v11, %v249_v9  ;;  %v667_v1 = vld [vmem:[%s5633_s1 + $0x800] sm:$0xff]  ;;  %v669_v7 = vld [vmem:[%s5633_s1 + $0x810] sm:$0xff] }
 0x53a   :  { %v250_v12 = vld [vmem:[%s5632_s0 + $0x778] sm:$0x3f] }
 0x53b   :  { %1448 = vst.msk [vmem:[%s5634_s2 + $0x758] sm:$0x3f] %vm1213_vm1, %v1046_v5  ;;  %v1050_v15 = vadd.f32 %v650_v13, %v250_v12  ;;  %v671_v12 = vld [vmem:[%s5633_s1 + $0x820] sm:$0xff] }
 0x53c   :  { %1449 = vst.msk [vmem:[%s5634_s2 + $0x760] sm:$0xff] %vm1211_vm0, %v1047_v6 }
 0x543   :  { %v251_v16 = vld [vmem:[%s5632_s0 + $0x780] sm:$0xff]  ;;  %v252_v18 = vld [vmem:[%s5632_s0 + $0x788] sm:$0x3f] }
 0x544   :  { %1450 = vst.msk [vmem:[%s5634_s2 + $0x768] sm:$0x3f] %vm1213_vm1, %v1048_v10  ;;  %v1051_v19 = vadd.f32 %v651_v17, %v251_v16  ;;  %v1052_v23 = vadd.f32 %v652_v20, %v252_v18  ;;  %v670_v10 = vld [vmem:[%s5633_s1 + $0x818] sm:$0x3f]  ;;  %v672_v16 = vld [vmem:[%s5633_s1 + $0x828] sm:$0x3f] }
 0x54b   :  { %v253_v21 = vld [vmem:[%s5632_s0 + $0x790] sm:$0xff] }
 0x54c   :  { %1451 = vst.msk [vmem:[%s5634_s2 + $0x770] sm:$0xff] %vm1211_vm0, %v1049_v14  ;;  %v1053_v24 = vadd.f32 %v653_v22, %v253_v21  ;;  %v674_v21 = vld [vmem:[%s5633_s1 + $0x838] sm:$0x3f] }
 0x54d   :  { %1452 = vst.msk [vmem:[%s5634_s2 + $0x778] sm:$0x3f] %vm1213_vm1, %v1050_v15 }
 0x554   :  { %v254_v25 = vld [vmem:[%s5632_s0 + $0x798] sm:$0x3f]  ;;  %v255_v27 = vld [vmem:[%s5632_s0 + $0x7a0] sm:$0xff] }
 0x555   :  { %1453 = vst.msk [vmem:[%s5634_s2 + $0x780] sm:$0xff] %vm1211_vm0, %v1051_v19  ;;  %v1054_v28 = vadd.f32 %v654_v26, %v254_v25  ;;  %v1055_v32 = vadd.f32 %v655_v29, %v255_v27  ;;  %v673_v19 = vld [vmem:[%s5633_s1 + $0x830] sm:$0xff]  ;;  %v675_v25 = vld [vmem:[%s5633_s1 + $0x840] sm:$0xff] }
 0x55c   :  { %v256_v30 = vld [vmem:[%s5632_s0 + $0x7a8] sm:$0x3f] }
 0x55d   :  { %1454 = vst.msk [vmem:[%s5634_s2 + $0x788] sm:$0x3f] %vm1213_vm1, %v1052_v23  ;;  %v1056_v33 = vadd.f32 %v656_v31, %v256_v30  ;;  %v677_v30 = vld [vmem:[%s5633_s1 + $0x850] sm:$0xff] }
 0x55e   :  { %1455 = vst.msk [vmem:[%s5634_s2 + $0x790] sm:$0xff] %vm1211_vm0, %v1053_v24 }
 0x565   :  { %v257_v34 = vld [vmem:[%s5632_s0 + $0x7b0] sm:$0xff]  ;;  %v258_v36 = vld [vmem:[%s5632_s0 + $0x7b8] sm:$0x3f] }
 0x566   :  { %1456 = vst.msk [vmem:[%s5634_s2 + $0x798] sm:$0x3f] %vm1213_vm1, %v1054_v28  ;;  %v1057_v37 = vadd.f32 %v657_v35, %v257_v34  ;;  %v1058_v41 = vadd.f32 %v658_v38, %v258_v36  ;;  %v676_v28 = vld [vmem:[%s5633_s1 + $0x848] sm:$0x3f]  ;;  %v678_v34 = vld [vmem:[%s5633_s1 + $0x858] sm:$0x3f] }
 0x56d   :  { %v259_v39 = vld [vmem:[%s5632_s0 + $0x7c0] sm:$0xff] }
 0x56e   :  { %1457 = vst.msk [vmem:[%s5634_s2 + $0x7a0] sm:$0xff] %vm1211_vm0, %v1055_v32  ;;  %v1059_v42 = vadd.f32 %v659_v40, %v259_v39  ;;  %v680_v39 = vld [vmem:[%s5633_s1 + $0x868] sm:$0x3f] }
 0x56f   :  { %1458 = vst.msk [vmem:[%s5634_s2 + $0x7a8] sm:$0x3f] %vm1213_vm1, %v1056_v33 }
 0x576   :  { %v260_v43 = vld [vmem:[%s5632_s0 + $0x7c8] sm:$0x3f]  ;;  %v261_v45 = vld [vmem:[%s5632_s0 + $0x7d0] sm:$0xff] }
 0x577   :  { %1459 = vst.msk [vmem:[%s5634_s2 + $0x7b0] sm:$0xff] %vm1211_vm0, %v1057_v37  ;;  %v1060_v46 = vadd.f32 %v660_v44, %v260_v43  ;;  %v1061_v50 = vadd.f32 %v661_v47, %v261_v45  ;;  %v679_v37 = vld [vmem:[%s5633_s1 + $0x860] sm:$0xff]  ;;  %v681_v43 = vld [vmem:[%s5633_s1 + $0x870] sm:$0xff] }
 0x57e   :  { %v262_v48 = vld [vmem:[%s5632_s0 + $0x7d8] sm:$0x3f] }
 0x57f   :  { %1460 = vst.msk [vmem:[%s5634_s2 + $0x7b8] sm:$0x3f] %vm1213_vm1, %v1058_v41  ;;  %v1062_v51 = vadd.f32 %v662_v49, %v262_v48  ;;  %v683_v48 = vld [vmem:[%s5633_s1 + $0x880] sm:$0xff] }
 0x580   :  { %1461 = vst.msk [vmem:[%s5634_s2 + $0x7c0] sm:$0xff] %vm1211_vm0, %v1059_v42 }
 0x587   :  { %v263_v52 = vld [vmem:[%s5632_s0 + $0x7e0] sm:$0xff]  ;;  %v264_v54 = vld [vmem:[%s5632_s0 + $0x7e8] sm:$0x3f] }
 0x588   :  { %1462 = vst.msk [vmem:[%s5634_s2 + $0x7c8] sm:$0x3f] %vm1213_vm1, %v1060_v46  ;;  %v1063_v55 = vadd.f32 %v663_v53, %v263_v52  ;;  %v1064_v59 = vadd.f32 %v664_v56, %v264_v54  ;;  %v682_v46 = vld [vmem:[%s5633_s1 + $0x878] sm:$0x3f]  ;;  %v684_v52 = vld [vmem:[%s5633_s1 + $0x888] sm:$0x3f] }
 0x58f   :  { %v265_v57 = vld [vmem:[%s5632_s0 + $0x7f0] sm:$0xff] }
 0x590   :  { %1463 = vst.msk [vmem:[%s5634_s2 + $0x7d0] sm:$0xff] %vm1211_vm0, %v1061_v50  ;;  %v1065_v60 = vadd.f32 %v665_v58, %v265_v57  ;;  %v686_v57 = vld [vmem:[%s5633_s1 + $0x898] sm:$0x3f] }
 0x591   :  { %1464 = vst.msk [vmem:[%s5634_s2 + $0x7d8] sm:$0x3f] %vm1213_vm1, %v1062_v51 }
 0x598   :  { %v266_v61 = vld [vmem:[%s5632_s0 + $0x7f8] sm:$0x3f]  ;;  %v267_v63 = vld [vmem:[%s5632_s0 + $0x800] sm:$0xff] }
 0x599   :  { %1465 = vst.msk [vmem:[%s5634_s2 + $0x7e0] sm:$0xff] %vm1211_vm0, %v1063_v55  ;;  %v1066_v0 = vadd.f32 %v666_v62, %v266_v61  ;;  %v1067_v4 = vadd.f32 %v667_v1, %v267_v63  ;;  %v685_v55 = vld [vmem:[%s5633_s1 + $0x890] sm:$0xff]  ;;  %v687_v61 = vld [vmem:[%s5633_s1 + $0x8a0] sm:$0xff] }
 0x5a0   :  { %v268_v2 = vld [vmem:[%s5632_s0 + $0x808] sm:$0x3f] }
 0x5a1   :  { %1466 = vst.msk [vmem:[%s5634_s2 + $0x7e8] sm:$0x3f] %vm1213_vm1, %v1064_v59  ;;  %v1068_v5 = vadd.f32 %v668_v3, %v268_v2  ;;  %v689_v2 = vld [vmem:[%s5633_s1 + $0x8b0] sm:$0xff] }
 0x5a2   :  { %1467 = vst.msk [vmem:[%s5634_s2 + $0x7f0] sm:$0xff] %vm1211_vm0, %v1065_v60 }
 0x5a9   :  { %v269_v6 = vld [vmem:[%s5632_s0 + $0x810] sm:$0xff]  ;;  %v270_v8 = vld [vmem:[%s5632_s0 + $0x818] sm:$0x3f] }
 0x5aa   :  { %1468 = vst.msk [vmem:[%s5634_s2 + $0x7f8] sm:$0x3f] %vm1213_vm1, %v1066_v0  ;;  %v1069_v9 = vadd.f32 %v669_v7, %v269_v6  ;;  %v1070_v13 = vadd.f32 %v670_v10, %v270_v8  ;;  %v688_v0 = vld [vmem:[%s5633_s1 + $0x8a8] sm:$0x3f]  ;;  %v690_v6 = vld [vmem:[%s5633_s1 + $0x8b8] sm:$0x3f] }
 0x5b1   :  { %v271_v11 = vld [vmem:[%s5632_s0 + $0x820] sm:$0xff] }
 0x5b2   :  { %1469 = vst.msk [vmem:[%s5634_s2 + $0x800] sm:$0xff] %vm1211_vm0, %v1067_v4  ;;  %v1071_v14 = vadd.f32 %v671_v12, %v271_v11  ;;  %v692_v11 = vld [vmem:[%s5633_s1 + $0x8c8] sm:$0x3f] }
 0x5b3   :  { %1470 = vst.msk [vmem:[%s5634_s2 + $0x808] sm:$0x3f] %vm1213_vm1, %v1068_v5 }
 0x5ba   :  { %v272_v15 = vld [vmem:[%s5632_s0 + $0x828] sm:$0x3f]  ;;  %v273_v17 = vld [vmem:[%s5632_s0 + $0x830] sm:$0xff] }
 0x5bb   :  { %1471 = vst.msk [vmem:[%s5634_s2 + $0x810] sm:$0xff] %vm1211_vm0, %v1069_v9  ;;  %v1072_v18 = vadd.f32 %v672_v16, %v272_v15  ;;  %v1073_v22 = vadd.f32 %v673_v19, %v273_v17  ;;  %v691_v9 = vld [vmem:[%s5633_s1 + $0x8c0] sm:$0xff]  ;;  %v693_v15 = vld [vmem:[%s5633_s1 + $0x8d0] sm:$0xff] }
 0x5c2   :  { %v274_v20 = vld [vmem:[%s5632_s0 + $0x838] sm:$0x3f] }
 0x5c3   :  { %1472 = vst.msk [vmem:[%s5634_s2 + $0x818] sm:$0x3f] %vm1213_vm1, %v1070_v13  ;;  %v1074_v23 = vadd.f32 %v674_v21, %v274_v20  ;;  %v695_v20 = vld [vmem:[%s5633_s1 + $0x8e0] sm:$0xff] }
 0x5c4   :  { %1473 = vst.msk [vmem:[%s5634_s2 + $0x820] sm:$0xff] %vm1211_vm0, %v1071_v14 }
 0x5cb   :  { %v275_v24 = vld [vmem:[%s5632_s0 + $0x840] sm:$0xff]  ;;  %v276_v26 = vld [vmem:[%s5632_s0 + $0x848] sm:$0x3f] }
 0x5cc   :  { %1474 = vst.msk [vmem:[%s5634_s2 + $0x828] sm:$0x3f] %vm1213_vm1, %v1072_v18  ;;  %v1075_v27 = vadd.f32 %v675_v25, %v275_v24  ;;  %v1076_v31 = vadd.f32 %v676_v28, %v276_v26  ;;  %v694_v18 = vld [vmem:[%s5633_s1 + $0x8d8] sm:$0x3f]  ;;  %v696_v24 = vld [vmem:[%s5633_s1 + $0x8e8] sm:$0x3f] }
 0x5d3   :  { %v277_v29 = vld [vmem:[%s5632_s0 + $0x850] sm:$0xff] }
 0x5d4   :  { %1475 = vst.msk [vmem:[%s5634_s2 + $0x830] sm:$0xff] %vm1211_vm0, %v1073_v22  ;;  %v1077_v32 = vadd.f32 %v677_v30, %v277_v29  ;;  %v698_v29 = vld [vmem:[%s5633_s1 + $0x8f8] sm:$0x3f] }
 0x5d5   :  { %1476 = vst.msk [vmem:[%s5634_s2 + $0x838] sm:$0x3f] %vm1213_vm1, %v1074_v23 }
 0x5dc   :  { %v278_v33 = vld [vmem:[%s5632_s0 + $0x858] sm:$0x3f]  ;;  %v279_v35 = vld [vmem:[%s5632_s0 + $0x860] sm:$0xff] }
 0x5dd   :  { %1477 = vst.msk [vmem:[%s5634_s2 + $0x840] sm:$0xff] %vm1211_vm0, %v1075_v27  ;;  %v1078_v36 = vadd.f32 %v678_v34, %v278_v33  ;;  %v1079_v40 = vadd.f32 %v679_v37, %v279_v35  ;;  %v697_v27 = vld [vmem:[%s5633_s1 + $0x8f0] sm:$0xff]  ;;  %v699_v33 = vld [vmem:[%s5633_s1 + $0x900] sm:$0xff] }
 0x5e4   :  { %v280_v38 = vld [vmem:[%s5632_s0 + $0x868] sm:$0x3f] }
 0x5e5   :  { %1478 = vst.msk [vmem:[%s5634_s2 + $0x848] sm:$0x3f] %vm1213_vm1, %v1076_v31  ;;  %v1080_v41 = vadd.f32 %v680_v39, %v280_v38  ;;  %v701_v38 = vld [vmem:[%s5633_s1 + $0x910] sm:$0xff] }
 0x5e6   :  { %1479 = vst.msk [vmem:[%s5634_s2 + $0x850] sm:$0xff] %vm1211_vm0, %v1077_v32 }
 0x5ed   :  { %v281_v42 = vld [vmem:[%s5632_s0 + $0x870] sm:$0xff]  ;;  %v282_v44 = vld [vmem:[%s5632_s0 + $0x878] sm:$0x3f] }
 0x5ee   :  { %1480 = vst.msk [vmem:[%s5634_s2 + $0x858] sm:$0x3f] %vm1213_vm1, %v1078_v36  ;;  %v1081_v45 = vadd.f32 %v681_v43, %v281_v42  ;;  %v1082_v49 = vadd.f32 %v682_v46, %v282_v44  ;;  %v700_v36 = vld [vmem:[%s5633_s1 + $0x908] sm:$0x3f]  ;;  %v702_v42 = vld [vmem:[%s5633_s1 + $0x918] sm:$0x3f] }
 0x5f5   :  { %v283_v47 = vld [vmem:[%s5632_s0 + $0x880] sm:$0xff] }
 0x5f6   :  { %1481 = vst.msk [vmem:[%s5634_s2 + $0x860] sm:$0xff] %vm1211_vm0, %v1079_v40  ;;  %v1083_v50 = vadd.f32 %v683_v48, %v283_v47  ;;  %v704_v47 = vld [vmem:[%s5633_s1 + $0x928] sm:$0x3f] }
 0x5f7   :  { %1482 = vst.msk [vmem:[%s5634_s2 + $0x868] sm:$0x3f] %vm1213_vm1, %v1080_v41 }
 0x5fe   :  { %v284_v51 = vld [vmem:[%s5632_s0 + $0x888] sm:$0x3f]  ;;  %v285_v53 = vld [vmem:[%s5632_s0 + $0x890] sm:$0xff] }
 0x5ff   :  { %1483 = vst.msk [vmem:[%s5634_s2 + $0x870] sm:$0xff] %vm1211_vm0, %v1081_v45  ;;  %v1084_v54 = vadd.f32 %v684_v52, %v284_v51  ;;  %v1085_v58 = vadd.f32 %v685_v55, %v285_v53  ;;  %v703_v45 = vld [vmem:[%s5633_s1 + $0x920] sm:$0xff]  ;;  %v705_v51 = vld [vmem:[%s5633_s1 + $0x930] sm:$0xff] }
 0x606   :  { %v286_v56 = vld [vmem:[%s5632_s0 + $0x898] sm:$0x3f] }
 0x607   :  { %1484 = vst.msk [vmem:[%s5634_s2 + $0x878] sm:$0x3f] %vm1213_vm1, %v1082_v49  ;;  %v1086_v59 = vadd.f32 %v686_v57, %v286_v56  ;;  %v707_v56 = vld [vmem:[%s5633_s1 + $0x940] sm:$0xff] }
 0x608   :  { %1485 = vst.msk [vmem:[%s5634_s2 + $0x880] sm:$0xff] %vm1211_vm0, %v1083_v50 }
 0x60f   :  { %v287_v60 = vld [vmem:[%s5632_s0 + $0x8a0] sm:$0xff]  ;;  %v288_v62 = vld [vmem:[%s5632_s0 + $0x8a8] sm:$0x3f] }
 0x610   :  { %1486 = vst.msk [vmem:[%s5634_s2 + $0x888] sm:$0x3f] %vm1213_vm1, %v1084_v54  ;;  %v1087_v63 = vadd.f32 %v687_v61, %v287_v60  ;;  %v1088_v3 = vadd.f32 %v688_v0, %v288_v62  ;;  %v706_v54 = vld [vmem:[%s5633_s1 + $0x938] sm:$0x3f]  ;;  %v708_v60 = vld [vmem:[%s5633_s1 + $0x948] sm:$0x3f] }
 0x617   :  { %v289_v1 = vld [vmem:[%s5632_s0 + $0x8b0] sm:$0xff] }
 0x618   :  { %1487 = vst.msk [vmem:[%s5634_s2 + $0x890] sm:$0xff] %vm1211_vm0, %v1085_v58  ;;  %v1089_v4 = vadd.f32 %v689_v2, %v289_v1  ;;  %v710_v1 = vld [vmem:[%s5633_s1 + $0x958] sm:$0x3f] }
 0x619   :  { %1488 = vst.msk [vmem:[%s5634_s2 + $0x898] sm:$0x3f] %vm1213_vm1, %v1086_v59 }
 0x620   :  { %v290_v5 = vld [vmem:[%s5632_s0 + $0x8b8] sm:$0x3f]  ;;  %v291_v7 = vld [vmem:[%s5632_s0 + $0x8c0] sm:$0xff] }
 0x621   :  { %1489 = vst.msk [vmem:[%s5634_s2 + $0x8a0] sm:$0xff] %vm1211_vm0, %v1087_v63  ;;  %v1090_v8 = vadd.f32 %v690_v6, %v290_v5  ;;  %v1091_v12 = vadd.f32 %v691_v9, %v291_v7  ;;  %v709_v63 = vld [vmem:[%s5633_s1 + $0x950] sm:$0xff]  ;;  %v711_v5 = vld [vmem:[%s5633_s1 + $0x960] sm:$0xff] }
 0x628   :  { %v292_v10 = vld [vmem:[%s5632_s0 + $0x8c8] sm:$0x3f] }
 0x629   :  { %1490 = vst.msk [vmem:[%s5634_s2 + $0x8a8] sm:$0x3f] %vm1213_vm1, %v1088_v3  ;;  %v1092_v13 = vadd.f32 %v692_v11, %v292_v10  ;;  %v713_v10 = vld [vmem:[%s5633_s1 + $0x970] sm:$0xff] }
 0x62a   :  { %1491 = vst.msk [vmem:[%s5634_s2 + $0x8b0] sm:$0xff] %vm1211_vm0, %v1089_v4 }
 0x631   :  { %v293_v14 = vld [vmem:[%s5632_s0 + $0x8d0] sm:$0xff]  ;;  %v294_v16 = vld [vmem:[%s5632_s0 + $0x8d8] sm:$0x3f] }
 0x632   :  { %1492 = vst.msk [vmem:[%s5634_s2 + $0x8b8] sm:$0x3f] %vm1213_vm1, %v1090_v8  ;;  %v1093_v17 = vadd.f32 %v693_v15, %v293_v14  ;;  %v1094_v21 = vadd.f32 %v694_v18, %v294_v16  ;;  %v712_v8 = vld [vmem:[%s5633_s1 + $0x968] sm:$0x3f]  ;;  %v714_v14 = vld [vmem:[%s5633_s1 + $0x978] sm:$0x3f] }
 0x639   :  { %v295_v19 = vld [vmem:[%s5632_s0 + $0x8e0] sm:$0xff] }
 0x63a   :  { %1493 = vst.msk [vmem:[%s5634_s2 + $0x8c0] sm:$0xff] %vm1211_vm0, %v1091_v12  ;;  %v1095_v22 = vadd.f32 %v695_v20, %v295_v19  ;;  %v716_v19 = vld [vmem:[%s5633_s1 + $0x988] sm:$0x3f] }
 0x63b   :  { %1494 = vst.msk [vmem:[%s5634_s2 + $0x8c8] sm:$0x3f] %vm1213_vm1, %v1092_v13 }
 0x642   :  { %v296_v23 = vld [vmem:[%s5632_s0 + $0x8e8] sm:$0x3f]  ;;  %v297_v25 = vld [vmem:[%s5632_s0 + $0x8f0] sm:$0xff] }
 0x643   :  { %1495 = vst.msk [vmem:[%s5634_s2 + $0x8d0] sm:$0xff] %vm1211_vm0, %v1093_v17  ;;  %v1096_v26 = vadd.f32 %v696_v24, %v296_v23  ;;  %v1097_v30 = vadd.f32 %v697_v27, %v297_v25  ;;  %v715_v17 = vld [vmem:[%s5633_s1 + $0x980] sm:$0xff]  ;;  %v717_v23 = vld [vmem:[%s5633_s1 + $0x990] sm:$0xff] }
 0x64a   :  { %v298_v28 = vld [vmem:[%s5632_s0 + $0x8f8] sm:$0x3f] }
 0x64b   :  { %1496 = vst.msk [vmem:[%s5634_s2 + $0x8d8] sm:$0x3f] %vm1213_vm1, %v1094_v21  ;;  %v1098_v31 = vadd.f32 %v698_v29, %v298_v28  ;;  %v719_v28 = vld [vmem:[%s5633_s1 + $0x9a0] sm:$0xff] }
 0x64c   :  { %1497 = vst.msk [vmem:[%s5634_s2 + $0x8e0] sm:$0xff] %vm1211_vm0, %v1095_v22 }
 0x653   :  { %v299_v32 = vld [vmem:[%s5632_s0 + $0x900] sm:$0xff]  ;;  %v300_v34 = vld [vmem:[%s5632_s0 + $0x908] sm:$0x3f] }
 0x654   :  { %1498 = vst.msk [vmem:[%s5634_s2 + $0x8e8] sm:$0x3f] %vm1213_vm1, %v1096_v26  ;;  %v1099_v35 = vadd.f32 %v699_v33, %v299_v32  ;;  %v1100_v39 = vadd.f32 %v700_v36, %v300_v34  ;;  %v718_v26 = vld [vmem:[%s5633_s1 + $0x998] sm:$0x3f]  ;;  %v720_v32 = vld [vmem:[%s5633_s1 + $0x9a8] sm:$0x3f] }
 0x65b   :  { %v301_v37 = vld [vmem:[%s5632_s0 + $0x910] sm:$0xff] }
 0x65c   :  { %1499 = vst.msk [vmem:[%s5634_s2 + $0x8f0] sm:$0xff] %vm1211_vm0, %v1097_v30  ;;  %v1101_v40 = vadd.f32 %v701_v38, %v301_v37  ;;  %v722_v37 = vld [vmem:[%s5633_s1 + $0x9b8] sm:$0x3f] }
 0x65d   :  { %1500 = vst.msk [vmem:[%s5634_s2 + $0x8f8] sm:$0x3f] %vm1213_vm1, %v1098_v31 }
 0x664   :  { %v302_v41 = vld [vmem:[%s5632_s0 + $0x918] sm:$0x3f]  ;;  %v303_v43 = vld [vmem:[%s5632_s0 + $0x920] sm:$0xff] }
 0x665   :  { %1501 = vst.msk [vmem:[%s5634_s2 + $0x900] sm:$0xff] %vm1211_vm0, %v1099_v35  ;;  %v1102_v44 = vadd.f32 %v702_v42, %v302_v41  ;;  %v1103_v48 = vadd.f32 %v703_v45, %v303_v43  ;;  %v721_v35 = vld [vmem:[%s5633_s1 + $0x9b0] sm:$0xff]  ;;  %v723_v41 = vld [vmem:[%s5633_s1 + $0x9c0] sm:$0xff] }
 0x66c   :  { %v304_v46 = vld [vmem:[%s5632_s0 + $0x928] sm:$0x3f] }
 0x66d   :  { %1502 = vst.msk [vmem:[%s5634_s2 + $0x908] sm:$0x3f] %vm1213_vm1, %v1100_v39  ;;  %v1104_v49 = vadd.f32 %v704_v47, %v304_v46  ;;  %v725_v46 = vld [vmem:[%s5633_s1 + $0x9d0] sm:$0xff] }
 0x66e   :  { %1503 = vst.msk [vmem:[%s5634_s2 + $0x910] sm:$0xff] %vm1211_vm0, %v1101_v40 }
 0x675   :  { %v305_v50 = vld [vmem:[%s5632_s0 + $0x930] sm:$0xff]  ;;  %v306_v52 = vld [vmem:[%s5632_s0 + $0x938] sm:$0x3f] }
 0x676   :  { %1504 = vst.msk [vmem:[%s5634_s2 + $0x918] sm:$0x3f] %vm1213_vm1, %v1102_v44  ;;  %v1105_v53 = vadd.f32 %v705_v51, %v305_v50  ;;  %v1106_v57 = vadd.f32 %v706_v54, %v306_v52  ;;  %v724_v44 = vld [vmem:[%s5633_s1 + $0x9c8] sm:$0x3f]  ;;  %v726_v50 = vld [vmem:[%s5633_s1 + $0x9d8] sm:$0x3f] }
 0x67d   :  { %v307_v55 = vld [vmem:[%s5632_s0 + $0x940] sm:$0xff] }
 0x67e   :  { %1505 = vst.msk [vmem:[%s5634_s2 + $0x920] sm:$0xff] %vm1211_vm0, %v1103_v48  ;;  %v1107_v58 = vadd.f32 %v707_v56, %v307_v55  ;;  %v728_v55 = vld [vmem:[%s5633_s1 + $0x9e8] sm:$0x3f] }
 0x67f   :  { %1506 = vst.msk [vmem:[%s5634_s2 + $0x928] sm:$0x3f] %vm1213_vm1, %v1104_v49 }
 0x686   :  { %v308_v59 = vld [vmem:[%s5632_s0 + $0x948] sm:$0x3f]  ;;  %v309_v61 = vld [vmem:[%s5632_s0 + $0x950] sm:$0xff] }
 0x687   :  { %1507 = vst.msk [vmem:[%s5634_s2 + $0x930] sm:$0xff] %vm1211_vm0, %v1105_v53  ;;  %v1108_v62 = vadd.f32 %v708_v60, %v308_v59  ;;  %v1109_v2 = vadd.f32 %v709_v63, %v309_v61  ;;  %v727_v53 = vld [vmem:[%s5633_s1 + $0x9e0] sm:$0xff]  ;;  %v729_v59 = vld [vmem:[%s5633_s1 + $0x9f0] sm:$0xff] }
 0x68e   :  { %v310_v0 = vld [vmem:[%s5632_s0 + $0x958] sm:$0x3f] }
 0x68f   :  { %1508 = vst.msk [vmem:[%s5634_s2 + $0x938] sm:$0x3f] %vm1213_vm1, %v1106_v57  ;;  %v1110_v3 = vadd.f32 %v710_v1, %v310_v0  ;;  %v731_v0 = vld [vmem:[%s5633_s1 + $0xa00] sm:$0xff] }
 0x690   :  { %1509 = vst.msk [vmem:[%s5634_s2 + $0x940] sm:$0xff] %vm1211_vm0, %v1107_v58 }
 0x697   :  { %v311_v4 = vld [vmem:[%s5632_s0 + $0x960] sm:$0xff]  ;;  %v312_v6 = vld [vmem:[%s5632_s0 + $0x968] sm:$0x3f] }
 0x698   :  { %1510 = vst.msk [vmem:[%s5634_s2 + $0x948] sm:$0x3f] %vm1213_vm1, %v1108_v62  ;;  %v1111_v7 = vadd.f32 %v711_v5, %v311_v4  ;;  %v1112_v11 = vadd.f32 %v712_v8, %v312_v6  ;;  %v730_v62 = vld [vmem:[%s5633_s1 + $0x9f8] sm:$0x3f]  ;;  %v732_v4 = vld [vmem:[%s5633_s1 + $0xa08] sm:$0x3f] }
 0x69f   :  { %v313_v9 = vld [vmem:[%s5632_s0 + $0x970] sm:$0xff] }
 0x6a0   :  { %1511 = vst.msk [vmem:[%s5634_s2 + $0x950] sm:$0xff] %vm1211_vm0, %v1109_v2  ;;  %v1113_v12 = vadd.f32 %v713_v10, %v313_v9  ;;  %v734_v9 = vld [vmem:[%s5633_s1 + $0xa18] sm:$0x3f] }
 0x6a1   :  { %1512 = vst.msk [vmem:[%s5634_s2 + $0x958] sm:$0x3f] %vm1213_vm1, %v1110_v3 }
 0x6a8   :  { %v314_v13 = vld [vmem:[%s5632_s0 + $0x978] sm:$0x3f]  ;;  %v315_v15 = vld [vmem:[%s5632_s0 + $0x980] sm:$0xff] }
 0x6a9   :  { %1513 = vst.msk [vmem:[%s5634_s2 + $0x960] sm:$0xff] %vm1211_vm0, %v1111_v7  ;;  %v1114_v16 = vadd.f32 %v714_v14, %v314_v13  ;;  %v1115_v20 = vadd.f32 %v715_v17, %v315_v15  ;;  %v733_v7 = vld [vmem:[%s5633_s1 + $0xa10] sm:$0xff]  ;;  %v735_v13 = vld [vmem:[%s5633_s1 + $0xa20] sm:$0xff] }
 0x6b0   :  { %v316_v18 = vld [vmem:[%s5632_s0 + $0x988] sm:$0x3f] }
 0x6b1   :  { %1514 = vst.msk [vmem:[%s5634_s2 + $0x968] sm:$0x3f] %vm1213_vm1, %v1112_v11  ;;  %v1116_v21 = vadd.f32 %v716_v19, %v316_v18  ;;  %v737_v18 = vld [vmem:[%s5633_s1 + $0xa30] sm:$0xff] }
 0x6b2   :  { %1515 = vst.msk [vmem:[%s5634_s2 + $0x970] sm:$0xff] %vm1211_vm0, %v1113_v12 }
 0x6b9   :  { %v317_v22 = vld [vmem:[%s5632_s0 + $0x990] sm:$0xff]  ;;  %v318_v24 = vld [vmem:[%s5632_s0 + $0x998] sm:$0x3f] }
 0x6ba   :  { %1516 = vst.msk [vmem:[%s5634_s2 + $0x978] sm:$0x3f] %vm1213_vm1, %v1114_v16  ;;  %v1117_v25 = vadd.f32 %v717_v23, %v317_v22  ;;  %v1118_v29 = vadd.f32 %v718_v26, %v318_v24  ;;  %v736_v16 = vld [vmem:[%s5633_s1 + $0xa28] sm:$0x3f]  ;;  %v738_v22 = vld [vmem:[%s5633_s1 + $0xa38] sm:$0x3f] }
 0x6c1   :  { %v319_v27 = vld [vmem:[%s5632_s0 + $0x9a0] sm:$0xff] }
 0x6c2   :  { %1517 = vst.msk [vmem:[%s5634_s2 + $0x980] sm:$0xff] %vm1211_vm0, %v1115_v20  ;;  %v1119_v30 = vadd.f32 %v719_v28, %v319_v27  ;;  %v740_v27 = vld [vmem:[%s5633_s1 + $0xa48] sm:$0x3f] }
 0x6c3   :  { %1518 = vst.msk [vmem:[%s5634_s2 + $0x988] sm:$0x3f] %vm1213_vm1, %v1116_v21 }
 0x6ca   :  { %v320_v31 = vld [vmem:[%s5632_s0 + $0x9a8] sm:$0x3f]  ;;  %v321_v33 = vld [vmem:[%s5632_s0 + $0x9b0] sm:$0xff] }
 0x6cb   :  { %1519 = vst.msk [vmem:[%s5634_s2 + $0x990] sm:$0xff] %vm1211_vm0, %v1117_v25  ;;  %v1120_v34 = vadd.f32 %v720_v32, %v320_v31  ;;  %v1121_v38 = vadd.f32 %v721_v35, %v321_v33  ;;  %v739_v25 = vld [vmem:[%s5633_s1 + $0xa40] sm:$0xff]  ;;  %v741_v31 = vld [vmem:[%s5633_s1 + $0xa50] sm:$0xff] }
 0x6d2   :  { %v322_v36 = vld [vmem:[%s5632_s0 + $0x9b8] sm:$0x3f] }
 0x6d3   :  { %1520 = vst.msk [vmem:[%s5634_s2 + $0x998] sm:$0x3f] %vm1213_vm1, %v1118_v29  ;;  %v1122_v39 = vadd.f32 %v722_v37, %v322_v36  ;;  %v743_v36 = vld [vmem:[%s5633_s1 + $0xa60] sm:$0xff] }
 0x6d4   :  { %1521 = vst.msk [vmem:[%s5634_s2 + $0x9a0] sm:$0xff] %vm1211_vm0, %v1119_v30 }
 0x6db   :  { %v323_v40 = vld [vmem:[%s5632_s0 + $0x9c0] sm:$0xff]  ;;  %v324_v42 = vld [vmem:[%s5632_s0 + $0x9c8] sm:$0x3f] }
 0x6dc   :  { %1522 = vst.msk [vmem:[%s5634_s2 + $0x9a8] sm:$0x3f] %vm1213_vm1, %v1120_v34  ;;  %v1123_v43 = vadd.f32 %v723_v41, %v323_v40  ;;  %v1124_v47 = vadd.f32 %v724_v44, %v324_v42  ;;  %v742_v34 = vld [vmem:[%s5633_s1 + $0xa58] sm:$0x3f]  ;;  %v744_v40 = vld [vmem:[%s5633_s1 + $0xa68] sm:$0x3f] }
 0x6e3   :  { %v325_v45 = vld [vmem:[%s5632_s0 + $0x9d0] sm:$0xff] }
 0x6e4   :  { %1523 = vst.msk [vmem:[%s5634_s2 + $0x9b0] sm:$0xff] %vm1211_vm0, %v1121_v38  ;;  %v1125_v48 = vadd.f32 %v725_v46, %v325_v45  ;;  %v746_v45 = vld [vmem:[%s5633_s1 + $0xa78] sm:$0x3f] }
 0x6e5   :  { %1524 = vst.msk [vmem:[%s5634_s2 + $0x9b8] sm:$0x3f] %vm1213_vm1, %v1122_v39 }
 0x6ec   :  { %v326_v49 = vld [vmem:[%s5632_s0 + $0x9d8] sm:$0x3f]  ;;  %v327_v51 = vld [vmem:[%s5632_s0 + $0x9e0] sm:$0xff] }
 0x6ed   :  { %1525 = vst.msk [vmem:[%s5634_s2 + $0x9c0] sm:$0xff] %vm1211_vm0, %v1123_v43  ;;  %v1126_v52 = vadd.f32 %v726_v50, %v326_v49  ;;  %v1127_v56 = vadd.f32 %v727_v53, %v327_v51  ;;  %v745_v43 = vld [vmem:[%s5633_s1 + $0xa70] sm:$0xff]  ;;  %v747_v49 = vld [vmem:[%s5633_s1 + $0xa80] sm:$0xff] }
 0x6f4   :  { %v328_v54 = vld [vmem:[%s5632_s0 + $0x9e8] sm:$0x3f] }
 0x6f5   :  { %1526 = vst.msk [vmem:[%s5634_s2 + $0x9c8] sm:$0x3f] %vm1213_vm1, %v1124_v47  ;;  %v1128_v57 = vadd.f32 %v728_v55, %v328_v54  ;;  %v749_v54 = vld [vmem:[%s5633_s1 + $0xa90] sm:$0xff] }
 0x6f6   :  { %1527 = vst.msk [vmem:[%s5634_s2 + $0x9d0] sm:$0xff] %vm1211_vm0, %v1125_v48 }
 0x6fd   :  { %v329_v58 = vld [vmem:[%s5632_s0 + $0x9f0] sm:$0xff]  ;;  %v330_v60 = vld [vmem:[%s5632_s0 + $0x9f8] sm:$0x3f] }
 0x6fe   :  { %1528 = vst.msk [vmem:[%s5634_s2 + $0x9d8] sm:$0x3f] %vm1213_vm1, %v1126_v52  ;;  %v1129_v61 = vadd.f32 %v729_v59, %v329_v58  ;;  %v1130_v1 = vadd.f32 %v730_v62, %v330_v60  ;;  %v748_v52 = vld [vmem:[%s5633_s1 + $0xa88] sm:$0x3f]  ;;  %v750_v58 = vld [vmem:[%s5633_s1 + $0xa98] sm:$0x3f] }
 0x705   :  { %v331_v63 = vld [vmem:[%s5632_s0 + $0xa00] sm:$0xff] }
 0x706   :  { %1529 = vst.msk [vmem:[%s5634_s2 + $0x9e0] sm:$0xff] %vm1211_vm0, %v1127_v56  ;;  %v1131_v2 = vadd.f32 %v731_v0, %v331_v63  ;;  %v752_v63 = vld [vmem:[%s5633_s1 + $0xaa8] sm:$0x3f] }
 0x707   :  { %1530 = vst.msk [vmem:[%s5634_s2 + $0x9e8] sm:$0x3f] %vm1213_vm1, %v1128_v57 }
 0x70e   :  { %v332_v3 = vld [vmem:[%s5632_s0 + $0xa08] sm:$0x3f]  ;;  %v333_v5 = vld [vmem:[%s5632_s0 + $0xa10] sm:$0xff] }
 0x70f   :  { %1531 = vst.msk [vmem:[%s5634_s2 + $0x9f0] sm:$0xff] %vm1211_vm0, %v1129_v61  ;;  %v1132_v6 = vadd.f32 %v732_v4, %v332_v3  ;;  %v1133_v10 = vadd.f32 %v733_v7, %v333_v5  ;;  %v751_v61 = vld [vmem:[%s5633_s1 + $0xaa0] sm:$0xff]  ;;  %v753_v3 = vld [vmem:[%s5633_s1 + $0xab0] sm:$0xff] }
 0x716   :  { %v334_v8 = vld [vmem:[%s5632_s0 + $0xa18] sm:$0x3f] }
 0x717   :  { %1532 = vst.msk [vmem:[%s5634_s2 + $0x9f8] sm:$0x3f] %vm1213_vm1, %v1130_v1  ;;  %v1134_v11 = vadd.f32 %v734_v9, %v334_v8  ;;  %v755_v8 = vld [vmem:[%s5633_s1 + $0xac0] sm:$0xff] }
 0x718   :  { %1533 = vst.msk [vmem:[%s5634_s2 + $0xa00] sm:$0xff] %vm1211_vm0, %v1131_v2 }
 0x71f   :  { %v335_v12 = vld [vmem:[%s5632_s0 + $0xa20] sm:$0xff]  ;;  %v336_v14 = vld [vmem:[%s5632_s0 + $0xa28] sm:$0x3f] }
 0x720   :  { %1534 = vst.msk [vmem:[%s5634_s2 + $0xa08] sm:$0x3f] %vm1213_vm1, %v1132_v6  ;;  %v1135_v15 = vadd.f32 %v735_v13, %v335_v12  ;;  %v1136_v19 = vadd.f32 %v736_v16, %v336_v14  ;;  %v754_v6 = vld [vmem:[%s5633_s1 + $0xab8] sm:$0x3f]  ;;  %v756_v12 = vld [vmem:[%s5633_s1 + $0xac8] sm:$0x3f] }
 0x727   :  { %v337_v17 = vld [vmem:[%s5632_s0 + $0xa30] sm:$0xff] }
 0x728   :  { %1535 = vst.msk [vmem:[%s5634_s2 + $0xa10] sm:$0xff] %vm1211_vm0, %v1133_v10  ;;  %v1137_v20 = vadd.f32 %v737_v18, %v337_v17  ;;  %v758_v17 = vld [vmem:[%s5633_s1 + $0xad8] sm:$0x3f] }
 0x729   :  { %1536 = vst.msk [vmem:[%s5634_s2 + $0xa18] sm:$0x3f] %vm1213_vm1, %v1134_v11 }
 0x730   :  { %v338_v21 = vld [vmem:[%s5632_s0 + $0xa38] sm:$0x3f]  ;;  %v339_v23 = vld [vmem:[%s5632_s0 + $0xa40] sm:$0xff] }
 0x731   :  { %1537 = vst.msk [vmem:[%s5634_s2 + $0xa20] sm:$0xff] %vm1211_vm0, %v1135_v15  ;;  %v1138_v24 = vadd.f32 %v738_v22, %v338_v21  ;;  %v1139_v28 = vadd.f32 %v739_v25, %v339_v23  ;;  %v757_v15 = vld [vmem:[%s5633_s1 + $0xad0] sm:$0xff]  ;;  %v759_v21 = vld [vmem:[%s5633_s1 + $0xae0] sm:$0xff] }
 0x738   :  { %v340_v26 = vld [vmem:[%s5632_s0 + $0xa48] sm:$0x3f] }
 0x739   :  { %1538 = vst.msk [vmem:[%s5634_s2 + $0xa28] sm:$0x3f] %vm1213_vm1, %v1136_v19  ;;  %v1140_v29 = vadd.f32 %v740_v27, %v340_v26  ;;  %v761_v26 = vld [vmem:[%s5633_s1 + $0xaf0] sm:$0xff] }
 0x73a   :  { %1539 = vst.msk [vmem:[%s5634_s2 + $0xa30] sm:$0xff] %vm1211_vm0, %v1137_v20 }
 0x741   :  { %v341_v30 = vld [vmem:[%s5632_s0 + $0xa50] sm:$0xff]  ;;  %v342_v32 = vld [vmem:[%s5632_s0 + $0xa58] sm:$0x3f] }
 0x742   :  { %1540 = vst.msk [vmem:[%s5634_s2 + $0xa38] sm:$0x3f] %vm1213_vm1, %v1138_v24  ;;  %v1141_v33 = vadd.f32 %v741_v31, %v341_v30  ;;  %v1142_v37 = vadd.f32 %v742_v34, %v342_v32  ;;  %v760_v24 = vld [vmem:[%s5633_s1 + $0xae8] sm:$0x3f]  ;;  %v762_v30 = vld [vmem:[%s5633_s1 + $0xaf8] sm:$0x3f] }
 0x749   :  { %v343_v35 = vld [vmem:[%s5632_s0 + $0xa60] sm:$0xff] }
 0x74a   :  { %1541 = vst.msk [vmem:[%s5634_s2 + $0xa40] sm:$0xff] %vm1211_vm0, %v1139_v28  ;;  %v1143_v38 = vadd.f32 %v743_v36, %v343_v35  ;;  %v764_v35 = vld [vmem:[%s5633_s1 + $0xb08] sm:$0x3f] }
 0x74b   :  { %1542 = vst.msk [vmem:[%s5634_s2 + $0xa48] sm:$0x3f] %vm1213_vm1, %v1140_v29 }
 0x752   :  { %v344_v39 = vld [vmem:[%s5632_s0 + $0xa68] sm:$0x3f]  ;;  %v345_v41 = vld [vmem:[%s5632_s0 + $0xa70] sm:$0xff] }
 0x753   :  { %1543 = vst.msk [vmem:[%s5634_s2 + $0xa50] sm:$0xff] %vm1211_vm0, %v1141_v33  ;;  %v1144_v42 = vadd.f32 %v744_v40, %v344_v39  ;;  %v1145_v46 = vadd.f32 %v745_v43, %v345_v41  ;;  %v763_v33 = vld [vmem:[%s5633_s1 + $0xb00] sm:$0xff]  ;;  %v765_v39 = vld [vmem:[%s5633_s1 + $0xb10] sm:$0xff] }
 0x75a   :  { %v346_v44 = vld [vmem:[%s5632_s0 + $0xa78] sm:$0x3f] }
 0x75b   :  { %1544 = vst.msk [vmem:[%s5634_s2 + $0xa58] sm:$0x3f] %vm1213_vm1, %v1142_v37  ;;  %v1146_v47 = vadd.f32 %v746_v45, %v346_v44  ;;  %v767_v44 = vld [vmem:[%s5633_s1 + $0xb20] sm:$0xff] }
 0x75c   :  { %1545 = vst.msk [vmem:[%s5634_s2 + $0xa60] sm:$0xff] %vm1211_vm0, %v1143_v38 }
 0x763   :  { %v347_v48 = vld [vmem:[%s5632_s0 + $0xa80] sm:$0xff]  ;;  %v348_v50 = vld [vmem:[%s5632_s0 + $0xa88] sm:$0x3f] }
 0x764   :  { %1546 = vst.msk [vmem:[%s5634_s2 + $0xa68] sm:$0x3f] %vm1213_vm1, %v1144_v42  ;;  %v1147_v51 = vadd.f32 %v747_v49, %v347_v48  ;;  %v1148_v55 = vadd.f32 %v748_v52, %v348_v50  ;;  %v766_v42 = vld [vmem:[%s5633_s1 + $0xb18] sm:$0x3f]  ;;  %v768_v48 = vld [vmem:[%s5633_s1 + $0xb28] sm:$0x3f] }
 0x76b   :  { %v349_v53 = vld [vmem:[%s5632_s0 + $0xa90] sm:$0xff] }
 0x76c   :  { %1547 = vst.msk [vmem:[%s5634_s2 + $0xa70] sm:$0xff] %vm1211_vm0, %v1145_v46  ;;  %v1149_v56 = vadd.f32 %v749_v54, %v349_v53  ;;  %v770_v53 = vld [vmem:[%s5633_s1 + $0xb38] sm:$0x3f] }
 0x76d   :  { %1548 = vst.msk [vmem:[%s5634_s2 + $0xa78] sm:$0x3f] %vm1213_vm1, %v1146_v47 }
 0x774   :  { %v350_v57 = vld [vmem:[%s5632_s0 + $0xa98] sm:$0x3f]  ;;  %v351_v59 = vld [vmem:[%s5632_s0 + $0xaa0] sm:$0xff] }
 0x775   :  { %1549 = vst.msk [vmem:[%s5634_s2 + $0xa80] sm:$0xff] %vm1211_vm0, %v1147_v51  ;;  %v1150_v60 = vadd.f32 %v750_v58, %v350_v57  ;;  %v1151_v0 = vadd.f32 %v751_v61, %v351_v59  ;;  %v769_v51 = vld [vmem:[%s5633_s1 + $0xb30] sm:$0xff]  ;;  %v771_v57 = vld [vmem:[%s5633_s1 + $0xb40] sm:$0xff] }
 0x77c   :  { %v352_v62 = vld [vmem:[%s5632_s0 + $0xaa8] sm:$0x3f] }
 0x77d   :  { %1550 = vst.msk [vmem:[%s5634_s2 + $0xa88] sm:$0x3f] %vm1213_vm1, %v1148_v55  ;;  %v1152_v1 = vadd.f32 %v752_v63, %v352_v62  ;;  %v773_v62 = vld [vmem:[%s5633_s1 + $0xb50] sm:$0xff] }
 0x77e   :  { %1551 = vst.msk [vmem:[%s5634_s2 + $0xa90] sm:$0xff] %vm1211_vm0, %v1149_v56 }
 0x785   :  { %v353_v2 = vld [vmem:[%s5632_s0 + $0xab0] sm:$0xff]  ;;  %v354_v4 = vld [vmem:[%s5632_s0 + $0xab8] sm:$0x3f] }
 0x786   :  { %1552 = vst.msk [vmem:[%s5634_s2 + $0xa98] sm:$0x3f] %vm1213_vm1, %v1150_v60  ;;  %v1153_v5 = vadd.f32 %v753_v3, %v353_v2  ;;  %v1154_v9 = vadd.f32 %v754_v6, %v354_v4  ;;  %v772_v60 = vld [vmem:[%s5633_s1 + $0xb48] sm:$0x3f]  ;;  %v774_v2 = vld [vmem:[%s5633_s1 + $0xb58] sm:$0x3f] }
 0x78d   :  { %v355_v7 = vld [vmem:[%s5632_s0 + $0xac0] sm:$0xff] }
 0x78e   :  { %1553 = vst.msk [vmem:[%s5634_s2 + $0xaa0] sm:$0xff] %vm1211_vm0, %v1151_v0  ;;  %v1155_v10 = vadd.f32 %v755_v8, %v355_v7  ;;  %v776_v7 = vld [vmem:[%s5633_s1 + $0xb68] sm:$0x3f] }
 0x78f   :  { %1554 = vst.msk [vmem:[%s5634_s2 + $0xaa8] sm:$0x3f] %vm1213_vm1, %v1152_v1 }
 0x796   :  { %v356_v11 = vld [vmem:[%s5632_s0 + $0xac8] sm:$0x3f]  ;;  %v357_v13 = vld [vmem:[%s5632_s0 + $0xad0] sm:$0xff] }
 0x797   :  { %1555 = vst.msk [vmem:[%s5634_s2 + $0xab0] sm:$0xff] %vm1211_vm0, %v1153_v5  ;;  %v1156_v14 = vadd.f32 %v756_v12, %v356_v11  ;;  %v1157_v18 = vadd.f32 %v757_v15, %v357_v13  ;;  %v775_v5 = vld [vmem:[%s5633_s1 + $0xb60] sm:$0xff]  ;;  %v777_v11 = vld [vmem:[%s5633_s1 + $0xb70] sm:$0xff] }
 0x79e   :  { %v358_v16 = vld [vmem:[%s5632_s0 + $0xad8] sm:$0x3f] }
 0x79f   :  { %1556 = vst.msk [vmem:[%s5634_s2 + $0xab8] sm:$0x3f] %vm1213_vm1, %v1154_v9  ;;  %v1158_v19 = vadd.f32 %v758_v17, %v358_v16  ;;  %v779_v16 = vld [vmem:[%s5633_s1 + $0xb80] sm:$0xff] }
 0x7a0   :  { %1557 = vst.msk [vmem:[%s5634_s2 + $0xac0] sm:$0xff] %vm1211_vm0, %v1155_v10 }
 0x7a7   :  { %v359_v20 = vld [vmem:[%s5632_s0 + $0xae0] sm:$0xff]  ;;  %v360_v22 = vld [vmem:[%s5632_s0 + $0xae8] sm:$0x3f] }
 0x7a8   :  { %1558 = vst.msk [vmem:[%s5634_s2 + $0xac8] sm:$0x3f] %vm1213_vm1, %v1156_v14  ;;  %v1159_v23 = vadd.f32 %v759_v21, %v359_v20  ;;  %v1160_v27 = vadd.f32 %v760_v24, %v360_v22  ;;  %v778_v14 = vld [vmem:[%s5633_s1 + $0xb78] sm:$0x3f]  ;;  %v780_v20 = vld [vmem:[%s5633_s1 + $0xb88] sm:$0x3f] }
 0x7af   :  { %v361_v25 = vld [vmem:[%s5632_s0 + $0xaf0] sm:$0xff] }
 0x7b0   :  { %1559 = vst.msk [vmem:[%s5634_s2 + $0xad0] sm:$0xff] %vm1211_vm0, %v1157_v18  ;;  %v1161_v28 = vadd.f32 %v761_v26, %v361_v25  ;;  %v782_v25 = vld [vmem:[%s5633_s1 + $0xb98] sm:$0x3f] }
 0x7b1   :  { %1560 = vst.msk [vmem:[%s5634_s2 + $0xad8] sm:$0x3f] %vm1213_vm1, %v1158_v19 }
 0x7b8   :  { %v362_v29 = vld [vmem:[%s5632_s0 + $0xaf8] sm:$0x3f]  ;;  %v363_v31 = vld [vmem:[%s5632_s0 + $0xb00] sm:$0xff] }
 0x7b9   :  { %1561 = vst.msk [vmem:[%s5634_s2 + $0xae0] sm:$0xff] %vm1211_vm0, %v1159_v23  ;;  %v1162_v32 = vadd.f32 %v762_v30, %v362_v29  ;;  %v1163_v36 = vadd.f32 %v763_v33, %v363_v31  ;;  %v781_v23 = vld [vmem:[%s5633_s1 + $0xb90] sm:$0xff]  ;;  %v783_v29 = vld [vmem:[%s5633_s1 + $0xba0] sm:$0xff] }
 0x7c0   :  { %v364_v34 = vld [vmem:[%s5632_s0 + $0xb08] sm:$0x3f] }
 0x7c1   :  { %1562 = vst.msk [vmem:[%s5634_s2 + $0xae8] sm:$0x3f] %vm1213_vm1, %v1160_v27  ;;  %v1164_v37 = vadd.f32 %v764_v35, %v364_v34  ;;  %v785_v34 = vld [vmem:[%s5633_s1 + $0xbb0] sm:$0xff] }
 0x7c2   :  { %1563 = vst.msk [vmem:[%s5634_s2 + $0xaf0] sm:$0xff] %vm1211_vm0, %v1161_v28 }
 0x7c9   :  { %v365_v38 = vld [vmem:[%s5632_s0 + $0xb10] sm:$0xff]  ;;  %v366_v40 = vld [vmem:[%s5632_s0 + $0xb18] sm:$0x3f] }
 0x7ca   :  { %1564 = vst.msk [vmem:[%s5634_s2 + $0xaf8] sm:$0x3f] %vm1213_vm1, %v1162_v32  ;;  %v1165_v41 = vadd.f32 %v765_v39, %v365_v38  ;;  %v1166_v45 = vadd.f32 %v766_v42, %v366_v40  ;;  %v784_v32 = vld [vmem:[%s5633_s1 + $0xba8] sm:$0x3f]  ;;  %v786_v38 = vld [vmem:[%s5633_s1 + $0xbb8] sm:$0x3f] }
 0x7d1   :  { %v367_v43 = vld [vmem:[%s5632_s0 + $0xb20] sm:$0xff] }
 0x7d2   :  { %1565 = vst.msk [vmem:[%s5634_s2 + $0xb00] sm:$0xff] %vm1211_vm0, %v1163_v36  ;;  %v1167_v46 = vadd.f32 %v767_v44, %v367_v43  ;;  %v788_v43 = vld [vmem:[%s5633_s1 + $0xbc8] sm:$0x3f] }
 0x7d3   :  { %1566 = vst.msk [vmem:[%s5634_s2 + $0xb08] sm:$0x3f] %vm1213_vm1, %v1164_v37 }
 0x7da   :  { %v368_v47 = vld [vmem:[%s5632_s0 + $0xb28] sm:$0x3f]  ;;  %v369_v49 = vld [vmem:[%s5632_s0 + $0xb30] sm:$0xff] }
 0x7db   :  { %1567 = vst.msk [vmem:[%s5634_s2 + $0xb10] sm:$0xff] %vm1211_vm0, %v1165_v41  ;;  %v1168_v50 = vadd.f32 %v768_v48, %v368_v47  ;;  %v1169_v54 = vadd.f32 %v769_v51, %v369_v49  ;;  %v787_v41 = vld [vmem:[%s5633_s1 + $0xbc0] sm:$0xff]  ;;  %v789_v47 = vld [vmem:[%s5633_s1 + $0xbd0] sm:$0xff] }
 0x7e2   :  { %v370_v52 = vld [vmem:[%s5632_s0 + $0xb38] sm:$0x3f] }
 0x7e3   :  { %1568 = vst.msk [vmem:[%s5634_s2 + $0xb18] sm:$0x3f] %vm1213_vm1, %v1166_v45  ;;  %v1170_v55 = vadd.f32 %v770_v53, %v370_v52  ;;  %v791_v52 = vld [vmem:[%s5633_s1 + $0xbe0] sm:$0xff] }
 0x7e4   :  { %1569 = vst.msk [vmem:[%s5634_s2 + $0xb20] sm:$0xff] %vm1211_vm0, %v1167_v46 }
 0x7eb   :  { %v371_v56 = vld [vmem:[%s5632_s0 + $0xb40] sm:$0xff]  ;;  %v372_v58 = vld [vmem:[%s5632_s0 + $0xb48] sm:$0x3f] }
 0x7ec   :  { %1570 = vst.msk [vmem:[%s5634_s2 + $0xb28] sm:$0x3f] %vm1213_vm1, %v1168_v50  ;;  %v1171_v59 = vadd.f32 %v771_v57, %v371_v56  ;;  %v1172_v63 = vadd.f32 %v772_v60, %v372_v58  ;;  %v790_v50 = vld [vmem:[%s5633_s1 + $0xbd8] sm:$0x3f]  ;;  %v792_v56 = vld [vmem:[%s5633_s1 + $0xbe8] sm:$0x3f] }
 0x7f3   :  { %v373_v61 = vld [vmem:[%s5632_s0 + $0xb50] sm:$0xff] }
 0x7f4   :  { %1571 = vst.msk [vmem:[%s5634_s2 + $0xb30] sm:$0xff] %vm1211_vm0, %v1169_v54  ;;  %v1173_v0 = vadd.f32 %v773_v62, %v373_v61  ;;  %v794_v61 = vld [vmem:[%s5633_s1 + $0xbf8] sm:$0x3f] }
 0x7f5   :  { %1572 = vst.msk [vmem:[%s5634_s2 + $0xb38] sm:$0x3f] %vm1213_vm1, %v1170_v55 }
 0x7fc   :  { %v374_v1 = vld [vmem:[%s5632_s0 + $0xb58] sm:$0x3f]  ;;  %v375_v3 = vld [vmem:[%s5632_s0 + $0xb60] sm:$0xff] }
 0x7fd   :  { %1573 = vst.msk [vmem:[%s5634_s2 + $0xb40] sm:$0xff] %vm1211_vm0, %v1171_v59  ;;  %v1174_v4 = vadd.f32 %v774_v2, %v374_v1  ;;  %v1175_v8 = vadd.f32 %v775_v5, %v375_v3  ;;  %v793_v59 = vld [vmem:[%s5633_s1 + $0xbf0] sm:$0xff]  ;;  %v795_v1 = vld [vmem:[%s5633_s1 + $0xc00] sm:$0xff] }
 0x804   :  { %v376_v6 = vld [vmem:[%s5632_s0 + $0xb68] sm:$0x3f] }
 0x805   :  { %1574 = vst.msk [vmem:[%s5634_s2 + $0xb48] sm:$0x3f] %vm1213_vm1, %v1172_v63  ;;  %v1176_v9 = vadd.f32 %v776_v7, %v376_v6  ;;  %v797_v6 = vld [vmem:[%s5633_s1 + $0xc10] sm:$0xff] }
 0x806   :  { %1575 = vst.msk [vmem:[%s5634_s2 + $0xb50] sm:$0xff] %vm1211_vm0, %v1173_v0 }
 0x80d   :  { %v377_v10 = vld [vmem:[%s5632_s0 + $0xb70] sm:$0xff]  ;;  %v378_v12 = vld [vmem:[%s5632_s0 + $0xb78] sm:$0x3f] }
 0x80e   :  { %1576 = vst.msk [vmem:[%s5634_s2 + $0xb58] sm:$0x3f] %vm1213_vm1, %v1174_v4  ;;  %v1177_v13 = vadd.f32 %v777_v11, %v377_v10  ;;  %v1178_v17 = vadd.f32 %v778_v14, %v378_v12  ;;  %v796_v4 = vld [vmem:[%s5633_s1 + $0xc08] sm:$0x3f]  ;;  %v798_v10 = vld [vmem:[%s5633_s1 + $0xc18] sm:$0x3f] }
 0x815   :  { %v379_v15 = vld [vmem:[%s5632_s0 + $0xb80] sm:$0xff] }
 0x816   :  { %1577 = vst.msk [vmem:[%s5634_s2 + $0xb60] sm:$0xff] %vm1211_vm0, %v1175_v8  ;;  %v1179_v18 = vadd.f32 %v779_v16, %v379_v15  ;;  %v800_v15 = vld [vmem:[%s5633_s1 + $0xc28] sm:$0x3f] }
 0x817   :  { %1578 = vst.msk [vmem:[%s5634_s2 + $0xb68] sm:$0x3f] %vm1213_vm1, %v1176_v9 }
 0x81e   :  { %v380_v19 = vld [vmem:[%s5632_s0 + $0xb88] sm:$0x3f]  ;;  %v381_v21 = vld [vmem:[%s5632_s0 + $0xb90] sm:$0xff] }
 0x81f   :  { %1579 = vst.msk [vmem:[%s5634_s2 + $0xb70] sm:$0xff] %vm1211_vm0, %v1177_v13  ;;  %v1180_v22 = vadd.f32 %v780_v20, %v380_v19  ;;  %v1181_v26 = vadd.f32 %v781_v23, %v381_v21  ;;  %v799_v13 = vld [vmem:[%s5633_s1 + $0xc20] sm:$0xff]  ;;  %v801_v19 = vld [vmem:[%s5633_s1 + $0xc30] sm:$0xff] }
 0x826   :  { %v382_v24 = vld [vmem:[%s5632_s0 + $0xb98] sm:$0x3f] }
 0x827   :  { %1580 = vst.msk [vmem:[%s5634_s2 + $0xb78] sm:$0x3f] %vm1213_vm1, %v1178_v17  ;;  %v1182_v27 = vadd.f32 %v782_v25, %v382_v24  ;;  %v803_v24 = vld [vmem:[%s5633_s1 + $0xc40] sm:$0xff] }
 0x828   :  { %1581 = vst.msk [vmem:[%s5634_s2 + $0xb80] sm:$0xff] %vm1211_vm0, %v1179_v18 }
 0x82f   :  { %v383_v28 = vld [vmem:[%s5632_s0 + $0xba0] sm:$0xff]  ;;  %v384_v30 = vld [vmem:[%s5632_s0 + $0xba8] sm:$0x3f] }
 0x830   :  { %1582 = vst.msk [vmem:[%s5634_s2 + $0xb88] sm:$0x3f] %vm1213_vm1, %v1180_v22  ;;  %v1183_v31 = vadd.f32 %v783_v29, %v383_v28  ;;  %v1184_v35 = vadd.f32 %v784_v32, %v384_v30  ;;  %v802_v22 = vld [vmem:[%s5633_s1 + $0xc38] sm:$0x3f]  ;;  %v804_v28 = vld [vmem:[%s5633_s1 + $0xc48] sm:$0x3f] }
 0x837   :  { %v385_v33 = vld [vmem:[%s5632_s0 + $0xbb0] sm:$0xff] }
 0x838   :  { %1583 = vst.msk [vmem:[%s5634_s2 + $0xb90] sm:$0xff] %vm1211_vm0, %v1181_v26  ;;  %v1185_v36 = vadd.f32 %v785_v34, %v385_v33  ;;  %v806_v33 = vld [vmem:[%s5633_s1 + $0xc58] sm:$0x3f] }
 0x839   :  { %1584 = vst.msk [vmem:[%s5634_s2 + $0xb98] sm:$0x3f] %vm1213_vm1, %v1182_v27 }
 0x840   :  { %v386_v37 = vld [vmem:[%s5632_s0 + $0xbb8] sm:$0x3f]  ;;  %v387_v39 = vld [vmem:[%s5632_s0 + $0xbc0] sm:$0xff] }
 0x841   :  { %1585 = vst.msk [vmem:[%s5634_s2 + $0xba0] sm:$0xff] %vm1211_vm0, %v1183_v31  ;;  %v1186_v40 = vadd.f32 %v786_v38, %v386_v37  ;;  %v1187_v44 = vadd.f32 %v787_v41, %v387_v39  ;;  %v805_v31 = vld [vmem:[%s5633_s1 + $0xc50] sm:$0xff]  ;;  %v807_v37 = vld [vmem:[%s5633_s1 + $0xc60] sm:$0xff] }
 0x848   :  { %v388_v42 = vld [vmem:[%s5632_s0 + $0xbc8] sm:$0x3f] }
 0x849   :  { %1586 = vst.msk [vmem:[%s5634_s2 + $0xba8] sm:$0x3f] %vm1213_vm1, %v1184_v35  ;;  %v1188_v45 = vadd.f32 %v788_v43, %v388_v42  ;;  %v809_v42 = vld [vmem:[%s5633_s1 + $0xc70] sm:$0xff] }
 0x84a   :  { %1587 = vst.msk [vmem:[%s5634_s2 + $0xbb0] sm:$0xff] %vm1211_vm0, %v1185_v36 }
 0x851   :  { %v389_v46 = vld [vmem:[%s5632_s0 + $0xbd0] sm:$0xff]  ;;  %v390_v48 = vld [vmem:[%s5632_s0 + $0xbd8] sm:$0x3f] }
 0x852   :  { %1588 = vst.msk [vmem:[%s5634_s2 + $0xbb8] sm:$0x3f] %vm1213_vm1, %v1186_v40  ;;  %v1189_v49 = vadd.f32 %v789_v47, %v389_v46  ;;  %v1190_v53 = vadd.f32 %v790_v50, %v390_v48  ;;  %v808_v40 = vld [vmem:[%s5633_s1 + $0xc68] sm:$0x3f]  ;;  %v810_v46 = vld [vmem:[%s5633_s1 + $0xc78] sm:$0x3f] }
 0x859   :  { %v391_v51 = vld [vmem:[%s5632_s0 + $0xbe0] sm:$0xff] }
 0x85a   :  { %1589 = vst.msk [vmem:[%s5634_s2 + $0xbc0] sm:$0xff] %vm1211_vm0, %v1187_v44  ;;  %v1191_v54 = vadd.f32 %v791_v52, %v391_v51 }
 0x85b   :  { %1590 = vst.msk [vmem:[%s5634_s2 + $0xbc8] sm:$0x3f] %vm1213_vm1, %v1188_v45 }
 0x862   :  { %v392_v55 = vld [vmem:[%s5632_s0 + $0xbe8] sm:$0x3f]  ;;  %v393_v57 = vld [vmem:[%s5632_s0 + $0xbf0] sm:$0xff] }
 0x863   :  { %1591 = vst.msk [vmem:[%s5634_s2 + $0xbd0] sm:$0xff] %vm1211_vm0, %v1189_v49  ;;  %v1192_v58 = vadd.f32 %v792_v56, %v392_v55  ;;  %v1193_v62 = vadd.f32 %v793_v59, %v393_v57 }
 0x86a   :  { %v394_v60 = vld [vmem:[%s5632_s0 + $0xbf8] sm:$0x3f] }
 0x86b   :  { %1592 = vst.msk [vmem:[%s5634_s2 + $0xbd8] sm:$0x3f] %vm1213_vm1, %v1190_v53  ;;  %v1194_v63 = vadd.f32 %v794_v61, %v394_v60 }
 0x86c   :  { %1593 = vst.msk [vmem:[%s5634_s2 + $0xbe0] sm:$0xff] %vm1211_vm0, %v1191_v54 }
 0x873   :  { %v395_v0 = vld [vmem:[%s5632_s0 + $0xc00] sm:$0xff]  ;;  %v396_v2 = vld [vmem:[%s5632_s0 + $0xc08] sm:$0x3f] }
 0x874   :  { %1594 = vst.msk [vmem:[%s5634_s2 + $0xbe8] sm:$0x3f] %vm1213_vm1, %v1192_v58  ;;  %v1195_v3 = vadd.f32 %v795_v1, %v395_v0  ;;  %v1196_v7 = vadd.f32 %v796_v4, %v396_v2 }
 0x87b   :  { %v397_v5 = vld [vmem:[%s5632_s0 + $0xc10] sm:$0xff] }
 0x87c   :  { %1595 = vst.msk [vmem:[%s5634_s2 + $0xbf0] sm:$0xff] %vm1211_vm0, %v1193_v62  ;;  %v1197_v8 = vadd.f32 %v797_v6, %v397_v5 }
 0x87d   :  { %1596 = vst.msk [vmem:[%s5634_s2 + $0xbf8] sm:$0x3f] %vm1213_vm1, %v1194_v63 }
 0x884   :  { %v398_v9 = vld [vmem:[%s5632_s0 + $0xc18] sm:$0x3f]  ;;  %v399_v11 = vld [vmem:[%s5632_s0 + $0xc20] sm:$0xff] }
 0x885   :  { %1597 = vst.msk [vmem:[%s5634_s2 + $0xc00] sm:$0xff] %vm1211_vm0, %v1195_v3  ;;  %v1198_v12 = vadd.f32 %v798_v10, %v398_v9  ;;  %v1199_v16 = vadd.f32 %v799_v13, %v399_v11 }
 0x88c   :  { %v400_v14 = vld [vmem:[%s5632_s0 + $0xc28] sm:$0x3f] }
 0x88d   :  { %1598 = vst.msk [vmem:[%s5634_s2 + $0xc08] sm:$0x3f] %vm1213_vm1, %v1196_v7  ;;  %v1200_v17 = vadd.f32 %v800_v15, %v400_v14 }
 0x88e   :  { %1599 = vst.msk [vmem:[%s5634_s2 + $0xc10] sm:$0xff] %vm1211_vm0, %v1197_v8 }
 0x895   :  { %v401_v18 = vld [vmem:[%s5632_s0 + $0xc30] sm:$0xff]  ;;  %v402_v20 = vld [vmem:[%s5632_s0 + $0xc38] sm:$0x3f] }
 0x896   :  { %1600 = vst.msk [vmem:[%s5634_s2 + $0xc18] sm:$0x3f] %vm1213_vm1, %v1198_v12  ;;  %v1201_v21 = vadd.f32 %v801_v19, %v401_v18  ;;  %v1202_v25 = vadd.f32 %v802_v22, %v402_v20 }
 0x89d   :  { %v403_v23 = vld [vmem:[%s5632_s0 + $0xc40] sm:$0xff] }
 0x89e   :  { %1601 = vst.msk [vmem:[%s5634_s2 + $0xc20] sm:$0xff] %vm1211_vm0, %v1199_v16  ;;  %v1203_v26 = vadd.f32 %v803_v24, %v403_v23 }
 0x89f   :  { %1602 = vst.msk [vmem:[%s5634_s2 + $0xc28] sm:$0x3f] %vm1213_vm1, %v1200_v17 }
 0x8a6   :  { %v404_v27 = vld [vmem:[%s5632_s0 + $0xc48] sm:$0x3f]  ;;  %v405_v29 = vld [vmem:[%s5632_s0 + $0xc50] sm:$0xff] }
 0x8a7   :  { %1603 = vst.msk [vmem:[%s5634_s2 + $0xc30] sm:$0xff] %vm1211_vm0, %v1201_v21  ;;  %v1204_v30 = vadd.f32 %v804_v28, %v404_v27  ;;  %v1205_v34 = vadd.f32 %v805_v31, %v405_v29 }
 0x8ae   :  { %v406_v32 = vld [vmem:[%s5632_s0 + $0xc58] sm:$0x3f] }
 0x8af   :  { %1604 = vst.msk [vmem:[%s5634_s2 + $0xc38] sm:$0x3f] %vm1213_vm1, %v1202_v25  ;;  %v1206_v35 = vadd.f32 %v806_v33, %v406_v32 }
 0x8b0   :  { %1605 = vst.msk [vmem:[%s5634_s2 + $0xc40] sm:$0xff] %vm1211_vm0, %v1203_v26 }
 0x8b7   :  { %v407_v36 = vld [vmem:[%s5632_s0 + $0xc60] sm:$0xff]  ;;  %v408_v38 = vld [vmem:[%s5632_s0 + $0xc68] sm:$0x3f] }
 0x8b8   :  { %1606 = vst.msk [vmem:[%s5634_s2 + $0xc48] sm:$0x3f] %vm1213_vm1, %v1204_v30  ;;  %v1207_v39 = vadd.f32 %v807_v37, %v407_v36  ;;  %v1208_v43 = vadd.f32 %v808_v40, %v408_v38 }
 0x8bf   :  { %v409_v41 = vld [vmem:[%s5632_s0 + $0xc70] sm:$0xff] }
 0x8c0   :  { %1607 = vst.msk [vmem:[%s5634_s2 + $0xc50] sm:$0xff] %vm1211_vm0, %v1205_v34  ;;  %v1209_v44 = vadd.f32 %v809_v42, %v409_v41 }
 0x8c1   :  { %1608 = vst.msk [vmem:[%s5634_s2 + $0xc58] sm:$0x3f] %vm1213_vm1, %v1206_v35 }
 0x8c8   :  { %v410_v45 = vld [vmem:[%s5632_s0 + $0xc78] sm:$0x3f] }
 0x8c9   :  { %1609 = vst.msk [vmem:[%s5634_s2 + $0xc60] sm:$0xff] %vm1211_vm0, %v1207_v39  ;;  %v1210_v47 = vadd.f32 %v810_v46, %v410_v45  ;;  %1611 = vst.msk [vmem:[%s5634_s2 + $0xc70] sm:$0xff] %vm1211_vm0, %v1209_v44 }
 0x8ca   :  { %1610 = vst.msk [vmem:[%s5634_s2 + $0xc68] sm:$0x3f] %vm1213_vm1, %v1208_v43 }
 0x8cb   :  { %1612 = vst.msk [vmem:[%s5634_s2 + $0xc78] sm:$0x3f] %vm1213_vm1, %v1210_v47 }

</bundles_post_ra>
